<compile_context>
chip_gen: v7x
topology: tpu7x:2x2x1
jax: 0.10.0
libtpu: 0.0.40
codegen_flags: <defaults>
</compile_context>

<pallas_src>
import functools

import jax
import jax.numpy as jnp
from jax import lax
from jax.experimental import pallas as pl
from jax.experimental.pallas import tpu as pltpu


def _round_up(x, m):
    return ((x + m - 1) // m) * m


def _lstm_recurrent_kernel(pregates_ref, whh_hbm, out_ref,
                           whh_vmem, h_scr, c_scr, dma_sem, *, hidden_pad, chunk):
    """Recurrent part of one LSTM layer; one chunk of `chunk` time steps per grid step.

    pregates_ref : (Tc, B, 4Hp)  x_t @ W_ih + (b_ih + b_hh), precomputed in the wrapper
    whh_hbm      : (Hp, 4Hp)     hidden->gates weights, resident in HBM (pl.ANY)
    out_ref      : (Tc, B, Hp)   hidden-state outputs for this chunk
    whh_vmem     : (Hp, 4Hp) f32 single-buffered VMEM copy of W_hh
    h_scr, c_scr : (B, Hp)   f32 recurrent state (persists across chunks)
    """
    ci = pl.program_id(0)

    @pl.when(ci == 0)
    def _():
        # One-time: stage resident weights into VMEM (single buffer) and zero the state.
        cp = pltpu.make_async_copy(whh_hbm, whh_vmem, dma_sem)
        cp.start()
        cp.wait()
        h_scr[...] = jnp.zeros_like(h_scr)
        c_scr[...] = jnp.zeros_like(c_scr)

    whh = whh_vmem[...]
    Hp = hidden_pad

    def step(i, carry):
        h, c = carry
        gates = pregates_ref[i].astype(jnp.float32) + jnp.dot(
            h, whh, preferred_element_type=jnp.float32)          # (B, 4Hp)
        # PyTorch gate order [i, f, g, o]; slices are 128-lane aligned (Hp % 128 == 0).
        i_g = jax.nn.sigmoid(gates[:, 0 * Hp:1 * Hp])
        f_g = jax.nn.sigmoid(gates[:, 1 * Hp:2 * Hp])
        g_g = jnp.tanh(gates[:, 2 * Hp:3 * Hp])
        o_g = jax.nn.sigmoid(gates[:, 3 * Hp:4 * Hp])
        c_new = f_g * c + i_g * g_g
        h_new = o_g * jnp.tanh(c_new)
        out_ref[i] = h_new.astype(out_ref.dtype)                 # lane-dense store
        return h_new, c_new

    h_fin, c_fin = lax.fori_loop(0, chunk, step, (h_scr[...], c_scr[...]), unroll=True)
    h_scr[...] = h_fin
    c_scr[...] = c_fin


def _lstm_layer(x_tbd, w_ih_t, w_hh_t, bias, hidden_pad, *, chunk=16):
    """One LSTM layer over the full sequence (time-major).

    x_tbd   : (T, B, Din)  layer input, time-major
    w_ih_t  : (Din, 4Hp)   input->gates weights (gate-padded, transposed)
    w_hh_t  : (Hp, 4Hp)    hidden->gates weights (gate-padded, transposed)
    bias    : (1, 4Hp)     b_ih + b_hh (gate-padded)
    returns : (T, B, Hp)
    """
    T, B, Din = x_tbd.shape
    four_hp = 4 * hidden_pad

    # Hoisted input projection: one big MXU matmul over all time steps, bias fused in.
    pregates = (
        jnp.dot(x_tbd.reshape(T * B, Din), w_ih_t, preferred_element_type=jnp.float32)
        + bias
    ).reshape(T, B, four_hp)

    tc = max(1, min(chunk, T))
    n_chunks = pl.cdiv(T, tc)
    t_pad = n_chunks * tc
    if t_pad != T:
        # Trailing padded steps only produce (discarded) outputs after T.
        pregates = jnp.pad(pregates, ((0, t_pad - T), (0, 0), (0, 0)))

    kernel = functools.partial(_lstm_recurrent_kernel, hidden_pad=hidden_pad, chunk=tc)

    out = pl.pallas_call(
        kernel,
        out_shape=jax.ShapeDtypeStruct((t_pad, B, hidden_pad), jnp.float32),
        grid_spec=pltpu.PrefetchScalarGridSpec(
            num_scalar_prefetch=0,
            grid=(n_chunks,),
            in_specs=[
                pl.BlockSpec((tc, B, four_hp), lambda c: (c, 0, 0)),
                pl.BlockSpec(memory_space=pl.ANY),   # W_hh: stays in HBM, copied once
            ],
            out_specs=pl.BlockSpec((tc, B, hidden_pad), lambda c: (c, 0, 0)),
            scratch_shapes=[
                pltpu.VMEM((hidden_pad, four_hp), jnp.float32),  # resident W_hh (1-buf)
                pltpu.VMEM((B, hidden_pad), jnp.float32),        # h state
                pltpu.VMEM((B, hidden_pad), jnp.float32),        # c state
                pltpu.SemaphoreType.DMA,
            ],
        ),
        compiler_params=pltpu.CompilerParams(
            # Chunks carry recurrent state -> strictly sequential grid.
            dimension_semantics=("arbitrary",),
        ),
    )(pregates, w_hh_t)

    return out[:T]


def _pack_gate_matrix(w, hidden, hidden_pad):
    """PyTorch gate-stacked (4H, D) weight -> (D, 4Hp), per-gate zero-padded + transposed."""
    d = w.shape[1]
    w4 = w.reshape(4, hidden, d)
    w4 = jnp.pad(w4, ((0, 0), (0, hidden_pad - hidden), (0, 0)))
    return jnp.transpose(w4, (2, 0, 1)).reshape(d, 4 * hidden_pad)


def _pack_gate_bias(b, hidden, hidden_pad):
    b4 = jnp.pad(b.reshape(4, hidden), ((0, 0), (0, hidden_pad - hidden)))
    return b4.reshape(1, 4 * hidden_pad)


def init_lstm_params(key, input_dim, hidden, num_layers):
    """PyTorch-style init U(-1/sqrt(H), 1/sqrt(H)); returns packed (padded) + raw params."""
    num_layers = min(3, num_layers)       # matches the module's min(3, num_layers)
    hidden_pad = _round_up(hidden, 128)   # lane-aligned gate blocks / lane-dense stores
    bound = 1.0 / float(hidden) ** 0.5
    params = []
    for layer in range(num_layers):
        d_in = input_dim if layer == 0 else hidden
        d_in_pad = input_dim if layer == 0 else hidden_pad
        key, k1, k2, k3, k4 = jax.random.split(key, 5)
        w_ih = jax.random.uniform(k1, (4 * hidden, d_in), jnp.float32, -bound, bound)
        w_hh = jax.random.uniform(k2, (4 * hidden, hidden), jnp.float32, -bound, bound)
        b_ih = jax.random.uniform(k3, (4 * hidden,), jnp.float32, -bound, bound)
        b_hh = jax.random.uniform(k4, (4 * hidden,), jnp.float32, -bound, bound)

        w_ih_t = _pack_gate_matrix(w_ih, hidden, hidden_pad)            # (d_in, 4Hp)
        if d_in_pad != d_in:  # layers >= 1 consume the padded (Hp-wide) activations
            w_ih_t = jnp.pad(w_ih_t, ((0, d_in_pad - d_in), (0, 0)))
        w_hh_t = _pack_gate_matrix(w_hh, hidden, hidden_pad)            # (hidden, 4Hp)
        w_hh_t = jnp.pad(w_hh_t, ((0, hidden_pad - hidden), (0, 0)))    # (Hp, 4Hp)

        params.append(dict(
            w_ih_t=w_ih_t,
            w_hh_t=w_hh_t,
            bias=_pack_gate_bias(b_ih + b_hh, hidden, hidden_pad),
            # raw PyTorch-layout copies used only by the pure-JAX reference
            ref_w_ih=w_ih, ref_w_hh=w_hh, ref_b_ih=b_ih, ref_b_hh=b_hh,
        ))
    return params, hidden_pad


def mod_lstm_forward(inputs_btd, params, hidden, hidden_pad, *, chunk=16):
    """mod_lstm.forward: (B, T, input_dim) -> (B, T, hidden) (full last-layer sequence)."""
    # TODO(synk): inter-layer dropout is a no-op here (dropout=0.0 / eval mode).
    x = jnp.transpose(inputs_btd, (1, 0, 2))          # time-major (T, B, D)
    for p in params:
        x = _lstm_layer(x, p["w_ih_t"], p["w_hh_t"], p["bias"], hidden_pad, chunk=chunk)
    x = x[:, :, :hidden]                              # drop lane padding
    return jnp.transpose(x, (1, 0, 2))                # (B, T, H)


def uni_rnn_encoder_forward(inputs_btd, params, hidden, hidden_pad, *, chunk=16):
    """uni_rnn_encoder.forward (rnn_type='lstm', enc_in=None, enc_att=False):
    identity front-end -> LSTM stack -> last time step."""
    # TODO(synk): enc_in='linear'/'resnet' front-ends, TimeWiseAttention, and the
    # gru/transformer/tcn rnn_types are not implemented (default config shown above).
    seq = mod_lstm_forward(inputs_btd, params, hidden, hidden_pad, chunk=chunk)
    return seq[:, -1]


def _lstm_reference(inputs_btd, params, hidden):
    """Pure-JAX reference (lax.scan) matching PyTorch nn.LSTM semantics (unpadded)."""
    x = jnp.transpose(inputs_btd, (1, 0, 2))          # (T, B, D)
    B = x.shape[1]
    for p in params:
        w_ih_t = p["ref_w_ih"].T
        w_hh_t = p["ref_w_hh"].T
        b = (p["ref_b_ih"] + p["ref_b_hh"])[None, :]

        def step(carry, x_t, w_ih_t=w_ih_t, w_hh_t=w_hh_t, b=b):
            h, c = carry
            gates = x_t @ w_ih_t + h @ w_hh_t + b
            i_g, f_g, g_g, o_g = jnp.split(gates, 4, axis=-1)
            i_g = jax.nn.sigmoid(i_g)
            f_g = jax.nn.sigmoid(f_g)
            g_g = jnp.tanh(g_g)
            o_g = jax.nn.sigmoid(o_g)
            c_new = f_g * c + i_g * g_g
            h_new = o_g * jnp.tanh(c_new)
            return (h_new, c_new), h_new

        init = (jnp.zeros((B, hidden), jnp.float32), jnp.zeros((B, hidden), jnp.float32))
        _, x = lax.scan(step, init, x)
    return jnp.transpose(x, (1, 0, 2))


if __name__ == "__main__":
    B, T, INPUT_DIM, HIDDEN, NUM_LAYERS = 2, 8, 16, 32, 2

    key = jax.random.PRNGKey(0)
    key, kx = jax.random.split(key)
    inputs = jax.random.normal(kx, (B, T, INPUT_DIM), jnp.float32)

    params, hidden_pad = init_lstm_params(key, INPUT_DIM, HIDDEN, NUM_LAYERS)

    seq = jax.block_until_ready(mod_lstm_forward(inputs, params, HIDDEN, hidden_pad))
    enc = jax.block_until_ready(uni_rnn_encoder_forward(inputs, params, HIDDEN, hidden_pad))

    ref_seq = jax.block_until_ready(_lstm_reference(inputs, params, HIDDEN))
    assert seq.shape == (B, T, HIDDEN)
    assert enc.shape == (B, HIDDEN)
    assert jnp.allclose(seq, ref_seq, atol=1e-5, rtol=1e-5)
    assert jnp.allclose(enc, ref_seq[:, -1], atol=1e-5, rtol=1e-5)

    print("KERNEL_OK")
</pallas_src>

<mosaic_0001>
module attributes {stable_mosaic.version = 11 : i64} {
  func.func @_lstm_recurrent_kernel(%arg0: i32, %arg1: memref<8x2x512xf32, #tpu.memory_space<vmem>>, %arg2: memref<128x512xf32, #tpu.memory_space<any>>, %arg3: memref<8x2x128xf32, #tpu.memory_space<vmem>>, %arg4: memref<128x512xf32, #tpu.memory_space<vmem>>, %arg5: memref<2x128xf32, #tpu.memory_space<vmem>>, %arg6: memref<2x128xf32, #tpu.memory_space<vmem>>, %arg7: memref<!tpu.dma_semaphore, #tpu.memory_space<semaphore_mem>>) attributes {dimension_semantics = [#tpu.dimension_semantics<arbitrary>], iteration_bounds = array<i64: 1>, scalar_prefetch = 0 : i64, scratch_operands = 4 : i64, tpu.core_type = #tpu.core_type<tc>, window_params = [{transform_indices = @transform_0, window_bounds = array<i64: 8, 2, 512>}, {}, {transform_indices = @transform_2, window_bounds = array<i64: 8, 2, 128>}]} {
    %c0_i32 = arith.constant 0 : i32
    %0 = arith.cmpi eq, %arg0, %c0_i32 : i32
    %1 = arith.extui %0 : i1 to i32
    %c0_i32_0 = arith.constant 0 : i32
    %2 = arith.cmpi ne, %1, %c0_i32_0 : i32
    scf.if %2 {
      tpu.enqueue_dma source(%arg2 : memref<128x512xf32, #tpu.memory_space<any>>) target(%arg4 : memref<128x512xf32, #tpu.memory_space<vmem>>) target_semaphore(%arg7 : memref<!tpu.dma_semaphore, #tpu.memory_space<semaphore_mem>>)
      tpu.wait_dma2 semaphore(%arg7 : memref<!tpu.dma_semaphore, #tpu.memory_space<semaphore_mem>>) src(%arg2 : memref<128x512xf32, #tpu.memory_space<any>>) dst(%arg4 : memref<128x512xf32, #tpu.memory_space<vmem>>)
      %cst_74 = arith.constant 0.000000e+00 : f32
      %280 = vector.broadcast %cst_74 : f32 to vector<2x128xf32>
      %c0_75 = arith.constant 0 : index
      %c0_76 = arith.constant 0 : index
      %281 = vector.load %arg5[%c0_75, %c0_76] : memref<2x128xf32, #tpu.memory_space<vmem>>, vector<2x128xf32>
      tpu.vector_store %arg5[%c0_75, %c0_76], %280 {strides = array<i32>} : memref<2x128xf32, #tpu.memory_space<vmem>>, vector<2x128xf32>,
      %cst_77 = arith.constant 0.000000e+00 : f32
      %282 = vector.broadcast %cst_77 : f32 to vector<2x128xf32>
      %c0_78 = arith.constant 0 : index
      %c0_79 = arith.constant 0 : index
      %283 = vector.load %arg6[%c0_78, %c0_79] : memref<2x128xf32, #tpu.memory_space<vmem>>, vector<2x128xf32>
      tpu.vector_store %arg6[%c0_78, %c0_79], %282 {strides = array<i32>} : memref<2x128xf32, #tpu.memory_space<vmem>>, vector<2x128xf32>,
    } else {
    }
    %c0 = arith.constant 0 : index
    %c0_1 = arith.constant 0 : index
    %3 = vector.load %arg4[%c0, %c0_1] : memref<128x512xf32, #tpu.memory_space<vmem>>, vector<128x512xf32>
    %c0_2 = arith.constant 0 : index
    %c0_3 = arith.constant 0 : index
    %4 = vector.load %arg5[%c0_2, %c0_3] : memref<2x128xf32, #tpu.memory_space<vmem>>, vector<2x128xf32>
    %c0_4 = arith.constant 0 : index
    %c0_5 = arith.constant 0 : index
    %5 = vector.load %arg6[%c0_4, %c0_5] : memref<2x128xf32, #tpu.memory_space<vmem>>, vector<2x128xf32>
    %c0_i32_6 = arith.constant 0 : i32
    %6 = arith.index_cast %c0_i32_6 : i32 to index
    %c0_7 = arith.constant 0 : index
    %c0_8 = arith.constant 0 : index
    %7 = vector.load %arg1[%6, %c0_7, %c0_8] : memref<8x2x512xf32, #tpu.memory_space<vmem>>, vector<1x2x512xf32>
    %8 = vector.shape_cast %7 : vector<1x2x512xf32> to vector<2x512xf32>
    %cst = arith.constant dense<0.000000e+00> : vector<2x512xf32>
    %9 = tpu.matmul %4, %3, %cst {dimension_numbers = #tpu.dot_dimension_numbers<[1], [0], [0], [1], [0, 0, 1, 1], [], []>} : vector<2x128xf32>, vector<128x512xf32>, vector<2x512xf32> -> vector<2x512xf32>
    %10 = arith.addf %8, %9 : vector<2x512xf32>
    %11 = vector.extract_strided_slice %10 {offsets = [0, 0], sizes = [2, 128], strides = [1, 1]} : vector<2x512xf32> to vector<2x128xf32>
    %12 = arith.negf %11 : vector<2x128xf32>
    %13 = math.exp %12 : vector<2x128xf32>
    %cst_9 = arith.constant 1.000000e+00 : f32
    %14 = vector.broadcast %cst_9 : f32 to vector<2x128xf32>
    %15 = arith.addf %14, %13 : vector<2x128xf32>
    %16 = arith.divf %14, %15 : vector<2x128xf32>
    %17 = vector.extract_strided_slice %10 {offsets = [0, 128], sizes = [2, 128], strides = [1, 1]} : vector<2x512xf32> to vector<2x128xf32>
    %18 = arith.negf %17 : vector<2x128xf32>
    %19 = math.exp %18 : vector<2x128xf32>
    %cst_10 = arith.constant 1.000000e+00 : f32
    %20 = vector.broadcast %cst_10 : f32 to vector<2x128xf32>
    %21 = arith.addf %20, %19 : vector<2x128xf32>
    %22 = arith.divf %20, %21 : vector<2x128xf32>
    %23 = vector.extract_strided_slice %10 {offsets = [0, 256], sizes = [2, 128], strides = [1, 1]} : vector<2x512xf32> to vector<2x128xf32>
    %24 = math.tanh %23 : vector<2x128xf32>
    %25 = vector.extract_strided_slice %10 {offsets = [0, 384], sizes = [2, 128], strides = [1, 1]} : vector<2x512xf32> to vector<2x128xf32>
    %26 = arith.negf %25 : vector<2x128xf32>
    %27 = math.exp %26 : vector<2x128xf32>
    %cst_11 = arith.constant 1.000000e+00 : f32
    %28 = vector.broadcast %cst_11 : f32 to vector<2x128xf32>
    %29 = arith.addf %28, %27 : vector<2x128xf32>
    %30 = arith.divf %28, %29 : vector<2x128xf32>
    %31 = arith.mulf %22, %5 : vector<2x128xf32>
    %32 = arith.mulf %16, %24 : vector<2x128xf32>
    %33 = arith.addf %31, %32 : vector<2x128xf32>
    %34 = math.tanh %33 : vector<2x128xf32>
    %35 = arith.mulf %30, %34 : vector<2x128xf32>
    %36 = arith.index_cast %c0_i32_6 : i32 to index
    %c0_12 = arith.constant 0 : index
    %c0_13 = arith.constant 0 : index
    %37 = vector.load %arg3[%36, %c0_12, %c0_13] : memref<8x2x128xf32, #tpu.memory_space<vmem>>, vector<1x2x128xf32>
    %38 = vector.shape_cast %37 : vector<1x2x128xf32> to vector<2x128xf32>
    %39 = vector.shape_cast %35 : vector<2x128xf32> to vector<1x2x128xf32>
    tpu.vector_store %arg3[%36, %c0_12, %c0_13], %39 {strides = array<i32>} : memref<8x2x128xf32, #tpu.memory_space<vmem>>, vector<1x2x128xf32>,
    %c1_i32 = arith.constant 1 : i32
    %40 = arith.index_cast %c1_i32 : i32 to index
    %c0_14 = arith.constant 0 : index
    %c0_15 = arith.constant 0 : index
    %41 = vector.load %arg1[%40, %c0_14, %c0_15] : memref<8x2x512xf32, #tpu.memory_space<vmem>>, vector<1x2x512xf32>
    %42 = vector.shape_cast %41 : vector<1x2x512xf32> to vector<2x512xf32>
    %cst_16 = arith.constant dense<0.000000e+00> : vector<2x512xf32>
    %43 = tpu.matmul %35, %3, %cst_16 {dimension_numbers = #tpu.dot_dimension_numbers<[1], [0], [0], [1], [0, 0, 1, 1], [], []>} : vector<2x128xf32>, vector<128x512xf32>, vector<2x512xf32> -> vector<2x512xf32>
    %44 = arith.addf %42, %43 : vector<2x512xf32>
    %45 = vector.extract_strided_slice %44 {offsets = [0, 0], sizes = [2, 128], strides = [1, 1]} : vector<2x512xf32> to vector<2x128xf32>
    %46 = arith.negf %45 : vector<2x128xf32>
    %47 = math.exp %46 : vector<2x128xf32>
    %cst_17 = arith.constant 1.000000e+00 : f32
    %48 = vector.broadcast %cst_17 : f32 to vector<2x128xf32>
    %49 = arith.addf %48, %47 : vector<2x128xf32>
    %50 = arith.divf %48, %49 : vector<2x128xf32>
    %51 = vector.extract_strided_slice %44 {offsets = [0, 128], sizes = [2, 128], strides = [1, 1]} : vector<2x512xf32> to vector<2x128xf32>
    %52 = arith.negf %51 : vector<2x128xf32>
    %53 = math.exp %52 : vector<2x128xf32>
    %cst_18 = arith.constant 1.000000e+00 : f32
    %54 = vector.broadcast %cst_18 : f32 to vector<2x128xf32>
    %55 = arith.addf %54, %53 : vector<2x128xf32>
    %56 = arith.divf %54, %55 : vector<2x128xf32>
    %57 = vector.extract_strided_slice %44 {offsets = [0, 256], sizes = [2, 128], strides = [1, 1]} : vector<2x512xf32> to vector<2x128xf32>
    %58 = math.tanh %57 : vector<2x128xf32>
    %59 = vector.extract_strided_slice %44 {offsets = [0, 384], sizes = [2, 128], strides = [1, 1]} : vector<2x512xf32> to vector<2x128xf32>
    %60 = arith.negf %59 : vector<2x128xf32>
    %61 = math.exp %60 : vector<2x128xf32>
    %cst_19 = arith.constant 1.000000e+00 : f32
    %62 = vector.broadcast %cst_19 : f32 to vector<2x128xf32>
    %63 = arith.addf %62, %61 : vector<2x128xf32>
    %64 = arith.divf %62, %63 : vector<2x128xf32>
    %65 = arith.mulf %56, %33 : vector<2x128xf32>
    %66 = arith.mulf %50, %58 : vector<2x128xf32>
    %67 = arith.addf %65, %66 : vector<2x128xf32>
    %68 = math.tanh %67 : vector<2x128xf32>
    %69 = arith.mulf %64, %68 : vector<2x128xf32>
    %70 = arith.index_cast %c1_i32 : i32 to index
    %c0_20 = arith.constant 0 : index
    %c0_21 = arith.constant 0 : index
    %71 = vector.load %arg3[%70, %c0_20, %c0_21] : memref<8x2x128xf32, #tpu.memory_space<vmem>>, vector<1x2x128xf32>
    %72 = vector.shape_cast %71 : vector<1x2x128xf32> to vector<2x128xf32>
    %73 = vector.shape_cast %69 : vector<2x128xf32> to vector<1x2x128xf32>
    tpu.vector_store %arg3[%70, %c0_20, %c0_21], %73 {strides = array<i32>} : memref<8x2x128xf32, #tpu.memory_space<vmem>>, vector<1x2x128xf32>,
    %c2_i32 = arith.constant 2 : i32
    %74 = arith.index_cast %c2_i32 : i32 to index
    %c0_22 = arith.constant 0 : index
    %c0_23 = arith.constant 0 : index
    %75 = vector.load %arg1[%74, %c0_22, %c0_23] : memref<8x2x512xf32, #tpu.memory_space<vmem>>, vector<1x2x512xf32>
    %76 = vector.shape_cast %75 : vector<1x2x512xf32> to vector<2x512xf32>
    %cst_24 = arith.constant dense<0.000000e+00> : vector<2x512xf32>
    %77 = tpu.matmul %69, %3, %cst_24 {dimension_numbers = #tpu.dot_dimension_numbers<[1], [0], [0], [1], [0, 0, 1, 1], [], []>} : vector<2x128xf32>, vector<128x512xf32>, vector<2x512xf32> -> vector<2x512xf32>
    %78 = arith.addf %76, %77 : vector<2x512xf32>
    %79 = vector.extract_strided_slice %78 {offsets = [0, 0], sizes = [2, 128], strides = [1, 1]} : vector<2x512xf32> to vector<2x128xf32>
    %80 = arith.negf %79 : vector<2x128xf32>
    %81 = math.exp %80 : vector<2x128xf32>
    %cst_25 = arith.constant 1.000000e+00 : f32
    %82 = vector.broadcast %cst_25 : f32 to vector<2x128xf32>
    %83 = arith.addf %82, %81 : vector<2x128xf32>
    %84 = arith.divf %82, %83 : vector<2x128xf32>
    %85 = vector.extract_strided_slice %78 {offsets = [0, 128], sizes = [2, 128], strides = [1, 1]} : vector<2x512xf32> to vector<2x128xf32>
    %86 = arith.negf %85 : vector<2x128xf32>
    %87 = math.exp %86 : vector<2x128xf32>
    %cst_26 = arith.constant 1.000000e+00 : f32
    %88 = vector.broadcast %cst_26 : f32 to vector<2x128xf32>
    %89 = arith.addf %88, %87 : vector<2x128xf32>
    %90 = arith.divf %88, %89 : vector<2x128xf32>
    %91 = vector.extract_strided_slice %78 {offsets = [0, 256], sizes = [2, 128], strides = [1, 1]} : vector<2x512xf32> to vector<2x128xf32>
    %92 = math.tanh %91 : vector<2x128xf32>
    %93 = vector.extract_strided_slice %78 {offsets = [0, 384], sizes = [2, 128], strides = [1, 1]} : vector<2x512xf32> to vector<2x128xf32>
    %94 = arith.negf %93 : vector<2x128xf32>
    %95 = math.exp %94 : vector<2x128xf32>
    %cst_27 = arith.constant 1.000000e+00 : f32
    %96 = vector.broadcast %cst_27 : f32 to vector<2x128xf32>
    %97 = arith.addf %96, %95 : vector<2x128xf32>
    %98 = arith.divf %96, %97 : vector<2x128xf32>
    %99 = arith.mulf %90, %67 : vector<2x128xf32>
    %100 = arith.mulf %84, %92 : vector<2x128xf32>
    %101 = arith.addf %99, %100 : vector<2x128xf32>
    %102 = math.tanh %101 : vector<2x128xf32>
    %103 = arith.mulf %98, %102 : vector<2x128xf32>
    %104 = arith.index_cast %c2_i32 : i32 to index
    %c0_28 = arith.constant 0 : index
    %c0_29 = arith.constant 0 : index
    %105 = vector.load %arg3[%104, %c0_28, %c0_29] : memref<8x2x128xf32, #tpu.memory_space<vmem>>, vector<1x2x128xf32>
    %106 = vector.shape_cast %105 : vector<1x2x128xf32> to vector<2x128xf32>
    %107 = vector.shape_cast %103 : vector<2x128xf32> to vector<1x2x128xf32>
    tpu.vector_store %arg3[%104, %c0_28, %c0_29], %107 {strides = array<i32>} : memref<8x2x128xf32, #tpu.memory_space<vmem>>, vector<1x2x128xf32>,
    %c3_i32 = arith.constant 3 : i32
    %108 = arith.index_cast %c3_i32 : i32 to index
    %c0_30 = arith.constant 0 : index
    %c0_31 = arith.constant 0 : index
    %109 = vector.load %arg1[%108, %c0_30, %c0_31] : memref<8x2x512xf32, #tpu.memory_space<vmem>>, vector<1x2x512xf32>
    %110 = vector.shape_cast %109 : vector<1x2x512xf32> to vector<2x512xf32>
    %cst_32 = arith.constant dense<0.000000e+00> : vector<2x512xf32>
    %111 = tpu.matmul %103, %3, %cst_32 {dimension_numbers = #tpu.dot_dimension_numbers<[1], [0], [0], [1], [0, 0, 1, 1], [], []>} : vector<2x128xf32>, vector<128x512xf32>, vector<2x512xf32> -> vector<2x512xf32>
    %112 = arith.addf %110, %111 : vector<2x512xf32>
    %113 = vector.extract_strided_slice %112 {offsets = [0, 0], sizes = [2, 128], strides = [1, 1]} : vector<2x512xf32> to vector<2x128xf32>
    %114 = arith.negf %113 : vector<2x128xf32>
    %115 = math.exp %114 : vector<2x128xf32>
    %cst_33 = arith.constant 1.000000e+00 : f32
    %116 = vector.broadcast %cst_33 : f32 to vector<2x128xf32>
    %117 = arith.addf %116, %115 : vector<2x128xf32>
    %118 = arith.divf %116, %117 : vector<2x128xf32>
    %119 = vector.extract_strided_slice %112 {offsets = [0, 128], sizes = [2, 128], strides = [1, 1]} : vector<2x512xf32> to vector<2x128xf32>
    %120 = arith.negf %119 : vector<2x128xf32>
    %121 = math.exp %120 : vector<2x128xf32>
    %cst_34 = arith.constant 1.000000e+00 : f32
    %122 = vector.broadcast %cst_34 : f32 to vector<2x128xf32>
    %123 = arith.addf %122, %121 : vector<2x128xf32>
    %124 = arith.divf %122, %123 : vector<2x128xf32>
    %125 = vector.extract_strided_slice %112 {offsets = [0, 256], sizes = [2, 128], strides = [1, 1]} : vector<2x512xf32> to vector<2x128xf32>
    %126 = math.tanh %125 : vector<2x128xf32>
    %127 = vector.extract_strided_slice %112 {offsets = [0, 384], sizes = [2, 128], strides = [1, 1]} : vector<2x512xf32> to vector<2x128xf32>
    %128 = arith.negf %127 : vector<2x128xf32>
    %129 = math.exp %128 : vector<2x128xf32>
    %cst_35 = arith.constant 1.000000e+00 : f32
    %130 = vector.broadcast %cst_35 : f32 to vector<2x128xf32>
    %131 = arith.addf %130, %129 : vector<2x128xf32>
    %132 = arith.divf %130, %131 : vector<2x128xf32>
    %133 = arith.mulf %124, %101 : vector<2x128xf32>
    %134 = arith.mulf %118, %126 : vector<2x128xf32>
    %135 = arith.addf %133, %134 : vector<2x128xf32>
    %136 = math.tanh %135 : vector<2x128xf32>
    %137 = arith.mulf %132, %136 : vector<2x128xf32>
    %138 = arith.index_cast %c3_i32 : i32 to index
    %c0_36 = arith.constant 0 : index
    %c0_37 = arith.constant 0 : index
    %139 = vector.load %arg3[%138, %c0_36, %c0_37] : memref<8x2x128xf32, #tpu.memory_space<vmem>>, vector<1x2x128xf32>
    %140 = vector.shape_cast %139 : vector<1x2x128xf32> to vector<2x128xf32>
    %141 = vector.shape_cast %137 : vector<2x128xf32> to vector<1x2x128xf32>
    tpu.vector_store %arg3[%138, %c0_36, %c0_37], %141 {strides = array<i32>} : memref<8x2x128xf32, #tpu.memory_space<vmem>>, vector<1x2x128xf32>,
    %c4_i32 = arith.constant 4 : i32
    %142 = arith.index_cast %c4_i32 : i32 to index
    %c0_38 = arith.constant 0 : index
    %c0_39 = arith.constant 0 : index
    %143 = vector.load %arg1[%142, %c0_38, %c0_39] : memref<8x2x512xf32, #tpu.memory_space<vmem>>, vector<1x2x512xf32>
    %144 = vector.shape_cast %143 : vector<1x2x512xf32> to vector<2x512xf32>
    %cst_40 = arith.constant dense<0.000000e+00> : vector<2x512xf32>
    %145 = tpu.matmul %137, %3, %cst_40 {dimension_numbers = #tpu.dot_dimension_numbers<[1], [0], [0], [1], [0, 0, 1, 1], [], []>} : vector<2x128xf32>, vector<128x512xf32>, vector<2x512xf32> -> vector<2x512xf32>
    %146 = arith.addf %144, %145 : vector<2x512xf32>
    %147 = vector.extract_strided_slice %146 {offsets = [0, 0], sizes = [2, 128], strides = [1, 1]} : vector<2x512xf32> to vector<2x128xf32>
    %148 = arith.negf %147 : vector<2x128xf32>
    %149 = math.exp %148 : vector<2x128xf32>
    %cst_41 = arith.constant 1.000000e+00 : f32
    %150 = vector.broadcast %cst_41 : f32 to vector<2x128xf32>
    %151 = arith.addf %150, %149 : vector<2x128xf32>
    %152 = arith.divf %150, %151 : vector<2x128xf32>
    %153 = vector.extract_strided_slice %146 {offsets = [0, 128], sizes = [2, 128], strides = [1, 1]} : vector<2x512xf32> to vector<2x128xf32>
    %154 = arith.negf %153 : vector<2x128xf32>
    %155 = math.exp %154 : vector<2x128xf32>
    %cst_42 = arith.constant 1.000000e+00 : f32
    %156 = vector.broadcast %cst_42 : f32 to vector<2x128xf32>
    %157 = arith.addf %156, %155 : vector<2x128xf32>
    %158 = arith.divf %156, %157 : vector<2x128xf32>
    %159 = vector.extract_strided_slice %146 {offsets = [0, 256], sizes = [2, 128], strides = [1, 1]} : vector<2x512xf32> to vector<2x128xf32>
    %160 = math.tanh %159 : vector<2x128xf32>
    %161 = vector.extract_strided_slice %146 {offsets = [0, 384], sizes = [2, 128], strides = [1, 1]} : vector<2x512xf32> to vector<2x128xf32>
    %162 = arith.negf %161 : vector<2x128xf32>
    %163 = math.exp %162 : vector<2x128xf32>
    %cst_43 = arith.constant 1.000000e+00 : f32
    %164 = vector.broadcast %cst_43 : f32 to vector<2x128xf32>
    %165 = arith.addf %164, %163 : vector<2x128xf32>
    %166 = arith.divf %164, %165 : vector<2x128xf32>
    %167 = arith.mulf %158, %135 : vector<2x128xf32>
    %168 = arith.mulf %152, %160 : vector<2x128xf32>
    %169 = arith.addf %167, %168 : vector<2x128xf32>
    %170 = math.tanh %169 : vector<2x128xf32>
    %171 = arith.mulf %166, %170 : vector<2x128xf32>
    %172 = arith.index_cast %c4_i32 : i32 to index
    %c0_44 = arith.constant 0 : index
    %c0_45 = arith.constant 0 : index
    %173 = vector.load %arg3[%172, %c0_44, %c0_45] : memref<8x2x128xf32, #tpu.memory_space<vmem>>, vector<1x2x128xf32>
    %174 = vector.shape_cast %173 : vector<1x2x128xf32> to vector<2x128xf32>
    %175 = vector.shape_cast %171 : vector<2x128xf32> to vector<1x2x128xf32>
    tpu.vector_store %arg3[%172, %c0_44, %c0_45], %175 {strides = array<i32>} : memref<8x2x128xf32, #tpu.memory_space<vmem>>, vector<1x2x128xf32>,
    %c5_i32 = arith.constant 5 : i32
    %176 = arith.index_cast %c5_i32 : i32 to index
    %c0_46 = arith.constant 0 : index
    %c0_47 = arith.constant 0 : index
    %177 = vector.load %arg1[%176, %c0_46, %c0_47] : memref<8x2x512xf32, #tpu.memory_space<vmem>>, vector<1x2x512xf32>
    %178 = vector.shape_cast %177 : vector<1x2x512xf32> to vector<2x512xf32>
    %cst_48 = arith.constant dense<0.000000e+00> : vector<2x512xf32>
    %179 = tpu.matmul %171, %3, %cst_48 {dimension_numbers = #tpu.dot_dimension_numbers<[1], [0], [0], [1], [0, 0, 1, 1], [], []>} : vector<2x128xf32>, vector<128x512xf32>, vector<2x512xf32> -> vector<2x512xf32>
    %180 = arith.addf %178, %179 : vector<2x512xf32>
    %181 = vector.extract_strided_slice %180 {offsets = [0, 0], sizes = [2, 128], strides = [1, 1]} : vector<2x512xf32> to vector<2x128xf32>
    %182 = arith.negf %181 : vector<2x128xf32>
    %183 = math.exp %182 : vector<2x128xf32>
    %cst_49 = arith.constant 1.000000e+00 : f32
    %184 = vector.broadcast %cst_49 : f32 to vector<2x128xf32>
    %185 = arith.addf %184, %183 : vector<2x128xf32>
    %186 = arith.divf %184, %185 : vector<2x128xf32>
    %187 = vector.extract_strided_slice %180 {offsets = [0, 128], sizes = [2, 128], strides = [1, 1]} : vector<2x512xf32> to vector<2x128xf32>
    %188 = arith.negf %187 : vector<2x128xf32>
    %189 = math.exp %188 : vector<2x128xf32>
    %cst_50 = arith.constant 1.000000e+00 : f32
    %190 = vector.broadcast %cst_50 : f32 to vector<2x128xf32>
    %191 = arith.addf %190, %189 : vector<2x128xf32>
    %192 = arith.divf %190, %191 : vector<2x128xf32>
    %193 = vector.extract_strided_slice %180 {offsets = [0, 256], sizes = [2, 128], strides = [1, 1]} : vector<2x512xf32> to vector<2x128xf32>
    %194 = math.tanh %193 : vector<2x128xf32>
    %195 = vector.extract_strided_slice %180 {offsets = [0, 384], sizes = [2, 128], strides = [1, 1]} : vector<2x512xf32> to vector<2x128xf32>
    %196 = arith.negf %195 : vector<2x128xf32>
    %197 = math.exp %196 : vector<2x128xf32>
    %cst_51 = arith.constant 1.000000e+00 : f32
    %198 = vector.broadcast %cst_51 : f32 to vector<2x128xf32>
    %199 = arith.addf %198, %197 : vector<2x128xf32>
    %200 = arith.divf %198, %199 : vector<2x128xf32>
    %201 = arith.mulf %192, %169 : vector<2x128xf32>
    %202 = arith.mulf %186, %194 : vector<2x128xf32>
    %203 = arith.addf %201, %202 : vector<2x128xf32>
    %204 = math.tanh %203 : vector<2x128xf32>
    %205 = arith.mulf %200, %204 : vector<2x128xf32>
    %206 = arith.index_cast %c5_i32 : i32 to index
    %c0_52 = arith.constant 0 : index
    %c0_53 = arith.constant 0 : index
    %207 = vector.load %arg3[%206, %c0_52, %c0_53] : memref<8x2x128xf32, #tpu.memory_space<vmem>>, vector<1x2x128xf32>
    %208 = vector.shape_cast %207 : vector<1x2x128xf32> to vector<2x128xf32>
    %209 = vector.shape_cast %205 : vector<2x128xf32> to vector<1x2x128xf32>
    tpu.vector_store %arg3[%206, %c0_52, %c0_53], %209 {strides = array<i32>} : memref<8x2x128xf32, #tpu.memory_space<vmem>>, vector<1x2x128xf32>,
    %c6_i32 = arith.constant 6 : i32
    %210 = arith.index_cast %c6_i32 : i32 to index
    %c0_54 = arith.constant 0 : index
    %c0_55 = arith.constant 0 : index
    %211 = vector.load %arg1[%210, %c0_54, %c0_55] : memref<8x2x512xf32, #tpu.memory_space<vmem>>, vector<1x2x512xf32>
    %212 = vector.shape_cast %211 : vector<1x2x512xf32> to vector<2x512xf32>
    %cst_56 = arith.constant dense<0.000000e+00> : vector<2x512xf32>
    %213 = tpu.matmul %205, %3, %cst_56 {dimension_numbers = #tpu.dot_dimension_numbers<[1], [0], [0], [1], [0, 0, 1, 1], [], []>} : vector<2x128xf32>, vector<128x512xf32>, vector<2x512xf32> -> vector<2x512xf32>
    %214 = arith.addf %212, %213 : vector<2x512xf32>
    %215 = vector.extract_strided_slice %214 {offsets = [0, 0], sizes = [2, 128], strides = [1, 1]} : vector<2x512xf32> to vector<2x128xf32>
    %216 = arith.negf %215 : vector<2x128xf32>
    %217 = math.exp %216 : vector<2x128xf32>
    %cst_57 = arith.constant 1.000000e+00 : f32
    %218 = vector.broadcast %cst_57 : f32 to vector<2x128xf32>
    %219 = arith.addf %218, %217 : vector<2x128xf32>
    %220 = arith.divf %218, %219 : vector<2x128xf32>
    %221 = vector.extract_strided_slice %214 {offsets = [0, 128], sizes = [2, 128], strides = [1, 1]} : vector<2x512xf32> to vector<2x128xf32>
    %222 = arith.negf %221 : vector<2x128xf32>
    %223 = math.exp %222 : vector<2x128xf32>
    %cst_58 = arith.constant 1.000000e+00 : f32
    %224 = vector.broadcast %cst_58 : f32 to vector<2x128xf32>
    %225 = arith.addf %224, %223 : vector<2x128xf32>
    %226 = arith.divf %224, %225 : vector<2x128xf32>
    %227 = vector.extract_strided_slice %214 {offsets = [0, 256], sizes = [2, 128], strides = [1, 1]} : vector<2x512xf32> to vector<2x128xf32>
    %228 = math.tanh %227 : vector<2x128xf32>
    %229 = vector.extract_strided_slice %214 {offsets = [0, 384], sizes = [2, 128], strides = [1, 1]} : vector<2x512xf32> to vector<2x128xf32>
    %230 = arith.negf %229 : vector<2x128xf32>
    %231 = math.exp %230 : vector<2x128xf32>
    %cst_59 = arith.constant 1.000000e+00 : f32
    %232 = vector.broadcast %cst_59 : f32 to vector<2x128xf32>
    %233 = arith.addf %232, %231 : vector<2x128xf32>
    %234 = arith.divf %232, %233 : vector<2x128xf32>
    %235 = arith.mulf %226, %203 : vector<2x128xf32>
    %236 = arith.mulf %220, %228 : vector<2x128xf32>
    %237 = arith.addf %235, %236 : vector<2x128xf32>
    %238 = math.tanh %237 : vector<2x128xf32>
    %239 = arith.mulf %234, %238 : vector<2x128xf32>
    %240 = arith.index_cast %c6_i32 : i32 to index
    %c0_60 = arith.constant 0 : index
    %c0_61 = arith.constant 0 : index
    %241 = vector.load %arg3[%240, %c0_60, %c0_61] : memref<8x2x128xf32, #tpu.memory_space<vmem>>, vector<1x2x128xf32>
    %242 = vector.shape_cast %241 : vector<1x2x128xf32> to vector<2x128xf32>
    %243 = vector.shape_cast %239 : vector<2x128xf32> to vector<1x2x128xf32>
    tpu.vector_store %arg3[%240, %c0_60, %c0_61], %243 {strides = array<i32>} : memref<8x2x128xf32, #tpu.memory_space<vmem>>, vector<1x2x128xf32>,
    %c7_i32 = arith.constant 7 : i32
    %244 = arith.index_cast %c7_i32 : i32 to index
    %c0_62 = arith.constant 0 : index
    %c0_63 = arith.constant 0 : index
    %245 = vector.load %arg1[%244, %c0_62, %c0_63] : memref<8x2x512xf32, #tpu.memory_space<vmem>>, vector<1x2x512xf32>
    %246 = vector.shape_cast %245 : vector<1x2x512xf32> to vector<2x512xf32>
    %cst_64 = arith.constant dense<0.000000e+00> : vector<2x512xf32>
    %247 = tpu.matmul %239, %3, %cst_64 {dimension_numbers = #tpu.dot_dimension_numbers<[1], [0], [0], [1], [0, 0, 1, 1], [], []>} : vector<2x128xf32>, vector<128x512xf32>, vector<2x512xf32> -> vector<2x512xf32>
    %248 = arith.addf %246, %247 : vector<2x512xf32>
    %249 = vector.extract_strided_slice %248 {offsets = [0, 0], sizes = [2, 128], strides = [1, 1]} : vector<2x512xf32> to vector<2x128xf32>
    %250 = arith.negf %249 : vector<2x128xf32>
    %251 = math.exp %250 : vector<2x128xf32>
    %cst_65 = arith.constant 1.000000e+00 : f32
    %252 = vector.broadcast %cst_65 : f32 to vector<2x128xf32>
    %253 = arith.addf %252, %251 : vector<2x128xf32>
    %254 = arith.divf %252, %253 : vector<2x128xf32>
    %255 = vector.extract_strided_slice %248 {offsets = [0, 128], sizes = [2, 128], strides = [1, 1]} : vector<2x512xf32> to vector<2x128xf32>
    %256 = arith.negf %255 : vector<2x128xf32>
    %257 = math.exp %256 : vector<2x128xf32>
    %cst_66 = arith.constant 1.000000e+00 : f32
    %258 = vector.broadcast %cst_66 : f32 to vector<2x128xf32>
    %259 = arith.addf %258, %257 : vector<2x128xf32>
    %260 = arith.divf %258, %259 : vector<2x128xf32>
    %261 = vector.extract_strided_slice %248 {offsets = [0, 256], sizes = [2, 128], strides = [1, 1]} : vector<2x512xf32> to vector<2x128xf32>
    %262 = math.tanh %261 : vector<2x128xf32>
    %263 = vector.extract_strided_slice %248 {offsets = [0, 384], sizes = [2, 128], strides = [1, 1]} : vector<2x512xf32> to vector<2x128xf32>
    %264 = arith.negf %263 : vector<2x128xf32>
    %265 = math.exp %264 : vector<2x128xf32>
    %cst_67 = arith.constant 1.000000e+00 : f32
    %266 = vector.broadcast %cst_67 : f32 to vector<2x128xf32>
    %267 = arith.addf %266, %265 : vector<2x128xf32>
    %268 = arith.divf %266, %267 : vector<2x128xf32>
    %269 = arith.mulf %260, %237 : vector<2x128xf32>
    %270 = arith.mulf %254, %262 : vector<2x128xf32>
    %271 = arith.addf %269, %270 : vector<2x128xf32>
    %272 = math.tanh %271 : vector<2x128xf32>
    %273 = arith.mulf %268, %272 : vector<2x128xf32>
    %274 = arith.index_cast %c7_i32 : i32 to index
    %c0_68 = arith.constant 0 : index
    %c0_69 = arith.constant 0 : index
    %275 = vector.load %arg3[%274, %c0_68, %c0_69] : memref<8x2x128xf32, #tpu.memory_space<vmem>>, vector<1x2x128xf32>
    %276 = vector.shape_cast %275 : vector<1x2x128xf32> to vector<2x128xf32>
    %277 = vector.shape_cast %273 : vector<2x128xf32> to vector<1x2x128xf32>
    tpu.vector_store %arg3[%274, %c0_68, %c0_69], %277 {strides = array<i32>} : memref<8x2x128xf32, #tpu.memory_space<vmem>>, vector<1x2x128xf32>,
    %c8_i32 = arith.constant 8 : i32
    %c0_70 = arith.constant 0 : index
    %c0_71 = arith.constant 0 : index
    %278 = vector.load %arg5[%c0_70, %c0_71] : memref<2x128xf32, #tpu.memory_space<vmem>>, vector<2x128xf32>
    tpu.vector_store %arg5[%c0_70, %c0_71], %273 {strides = array<i32>} : memref<2x128xf32, #tpu.memory_space<vmem>>, vector<2x128xf32>,
    %c0_72 = arith.constant 0 : index
    %c0_73 = arith.constant 0 : index
    %279 = vector.load %arg6[%c0_72, %c0_73] : memref<2x128xf32, #tpu.memory_space<vmem>>, vector<2x128xf32>
    tpu.vector_store %arg6[%c0_72, %c0_73], %271 {strides = array<i32>} : memref<2x128xf32, #tpu.memory_space<vmem>>, vector<2x128xf32>,
    return
  }
  func.func @transform_0(%arg0: i32) -> (i32, i32, i32) {
    %c0_i32 = arith.constant 0 : i32
    %c0_i32_0 = arith.constant 0 : i32
    %c0_i32_1 = arith.constant 0 : i32
    return %arg0, %c0_i32, %c0_i32_0 : i32, i32, i32
  }
  func.func @transform_2(%arg0: i32) -> (i32, i32, i32) {
    %c0_i32 = arith.constant 0 : i32
    %c0_i32_0 = arith.constant 0 : i32
    %c0_i32_1 = arith.constant 0 : i32
    return %arg0, %c0_i32, %c0_i32_0 : i32, i32, i32
  }
}

</mosaic_0001>

<bundles_post_ra>
// kernel: tpu_custom_call.1
= control target key start
LH: loop header
LB: loop body
LE: loop exit
PB: predicated region body
PF: predicated region fallthrough
CT: control target
= control target key end

     0   :  { %7 = vsyncpa [#allocation7], 0  ;;  %s2920_s0 = inlined_call_operand.hbm [shape: f32[8,2,512], index: 0, kind: input, shape index: {}]   ;;  %s2921_s1 = inlined_call_operand.hbm [shape: f32[128,512], index: 1, kind: input, shape index: {}]   ;;  %s2922_s2 = inlined_call_operand.hbm [shape: f32[8,2,128], index: 2, kind: output, shape index: {}]  }
   0x1   :  { %8 = vsyncpa [#allocation8], 0  ;;  %s2480_s9 = smov [#allocation6]   ;;  %s2408_s13 = scalar_lea.hbm %s2920_s0, 1024 }
   0x2   :  { %s14_s10 = sshll.u32 %s2480_s9, 4  ;;  %p2409_p0 = scmp.ne.s32.totalorder %s2920_s0, %s2408_s13  ;;  %s15_s10 = int_to_ptr.vmem [resolvable:$true] %s14_s10 }
   0x3   :  { %p2412_p1 = scmp.lt.u32.totalorder %s2408_s13, %s2920_s0 }
   0x5   :  { %p2414_p2 = pnand %p2412_p1, %p2409_p0 }
   0x7   :  { %2417 = shalt.err (!%p2414_p2)
}
   0x8   :  { %s2418_s18 = scalar_lea.vmem %s15_s10, 1024  ;;  %p2423_p4 = scmp.lt.s32.totalorder %s15_s10, %s15_s10 }
   0x9   :  { %p2419_p3 = scmp.ne.s32.totalorder %s15_s10, %s2418_s18  ;;  %p2424_p5 = scmp.lt.s32.totalorder %s2418_s18, %s2418_s18 }
   0xb   :  { %p2425_p6 = por %p2424_p5, %p2423_p4 }
   0xd   :  { %p2426_p7 = pnand %p2425_p6, %p2419_p3 }
   0xf   :  { %2429 = shalt.err (!%p2426_p7)
}
  0x10   :  { %s2481_s19 = smov 128   ;;  %s2482_s20 = smov 8  }
  0x11   :  { %20 = dma.hbm_to_vmem [thread:$0]  %s2920_s0, 1024, %s15_s10, [#allocation7], %s2481_s19, %s2481_s19, %s2482_s20  }
  0x12   :  { %2474 = dma.done.wait [#allocation7], 1024  }
  0x13   :  { %2475 = vsyncadd [#allocation7], 4294966272  ;;  %s2483_s23 = smov [#allocation2]   ;;  %s2430_s27 = scalar_lea.hbm %s2921_s1, 8192 }
  0x14   :  { %s35_s24 = sshll.u32 %s2483_s23, 4  ;;  %p2431_p8 = scmp.ne.s32.totalorder %s2921_s1, %s2430_s27  ;;  %s36_s24 = int_to_ptr.vmem [resolvable:$true] %s35_s24 }
  0x15   :  { %p2434_p9 = scmp.lt.u32.totalorder %s2430_s27, %s2921_s1 }
  0x17   :  { %p2436_p10 = pnand %p2434_p9, %p2431_p8 }
  0x19   :  { %2439 = shalt.err (!%p2436_p10)  }
  0x1a   :  { %s2440_s0 = scalar_lea.vmem %s36_s24, 8192  ;;  %p2445_p12 = scmp.lt.s32.totalorder %s36_s24, %s36_s24 }
  0x1b   :  { %p2441_p11 = scmp.ne.s32.totalorder %s36_s24, %s2440_s0  ;;  %p2446_p13 = scmp.lt.s32.totalorder %s2440_s0, %s2440_s0 }
  0x1d   :  { %p2447_p0 = por %p2446_p13, %p2445_p12 }
  0x1f   :  { %p2448_p1 = pnand %p2447_p0, %p2441_p11 }
  0x21   :  { %2451 = shalt.err (!%p2448_p1)  }
  0x22   :  { %38 = dma.hbm_to_vmem [thread:$0]  %s2921_s1, 8192, %s36_s24, [#allocation5] }
  0x23   :  { %2476 = dma.done.wait [#allocation5], 8192 }
  0x24   :  { %2477 = vsyncadd [#allocation5], 4294959104  ;;  %v2484_v0 = vmov 0.0   ;;  %v46_v1 = vld [vmem:[#allocation2 + $0x8] sm:$0xff]  ;;  %v48_v3 = vld [vmem:[#allocation2 + $0x18] sm:$0xff]  ;;  %s2486_s1 = smov [#allocation9]  }
  0x25   :  { %176 = vmatprep.mubr.f32.mxu0 %v2484_v0  ;;  %43 = vst [vmem:[#allocation3] sm:$0x3] %v2484_v0  ;;  %44 = vst [vmem:[#allocation4] sm:$0x3] %v2484_v0  ;;  %247 = vmatprep.mubr.f32.mxu1 %v2484_v0  ;;  %v50_v2 = vld [vmem:[#allocation2 + $0x28] sm:$0xff]  ;;  %v52_v5 = vld [vmem:[#allocation2 + $0x38] sm:$0xff] }
  0x26   :  { %v2532_v4 = vpack.c.bf16 %v50_v2, %v46_v1  ;;  %v45_v6 = vld [vmem:[#allocation2] sm:$0xff]  ;;  %v2534_v8 = vpack.c.bf16 %v52_v5, %v48_v3  ;;  %v47_v10 = vld [vmem:[#allocation2 + $0x10] sm:$0xff]  ;;  %v54_v12 = vld [vmem:[#allocation2 + $0x48] sm:$0xff]  ;;  %s1716_s6 = sshll.u32 %s2486_s1, 4  ;;  %s1717_s6 = int_to_ptr.vmem [resolvable:$true] %s1716_s6 }
  0x27   :  { %v49_v7 = vld [vmem:[#allocation2 + $0x20] sm:$0xff]  ;;  %v51_v11 = vld [vmem:[#allocation2 + $0x30] sm:$0xff]  ;;  %v58_v14 = vld [vmem:[#allocation2 + $0x68] sm:$0xff]  ;;  %s2452_s7 = scalar_lea.vmem %s1717_s6, 256  ;;  %p2457_p3 = scmp.lt.s32.totalorder %s1717_s6, %s1717_s6 }
  0x28   :  { %v2536_v9 = vpack.c.bf16 %v49_v7, %v45_v6  ;;  %1760 = vmatprep.subr.bf16.mxu0 %v2532_v4  ;;  %v2539_v13 = vpack.c.bf16 %v51_v11, %v47_v10  ;;  %v56_v15 = vld [vmem:[#allocation2 + $0x58] sm:$0xff]  ;;  %1792 = vmatprep.subr.bf16.mxu1 %v2534_v8  ;;  %v2543_v17 = vpack.c.bf16 %v58_v14, %v54_v12  ;;  %v53_v19 = vld [vmem:[#allocation2 + $0x40] sm:$0xff]  ;;  %v55_v21 = vld [vmem:[#allocation2 + $0x50] sm:$0xff]  ;;  %p2453_p2 = scmp.ne.s32.totalorder %s1717_s6, %s2452_s7  ;;  %p2458_p4 = scmp.lt.s32.totalorder %s2452_s7, %s2452_s7 }
  0x29   :  { %v60_v16 = vld [vmem:[#allocation2 + $0x78] sm:$0xff]  ;;  %v57_v20 = vld [vmem:[#allocation2 + $0x60] sm:$0xff]  ;;  %v59_v23 = vld [vmem:[#allocation2 + $0x70] sm:$0xff] }
  0x2a   :  { %1762 = vmatpush1.bf16.msra.mxu0 %v2536_v9  ;;  %v2545_v18 = vpack.c.bf16 %v60_v16, %v56_v15  ;;  %1794 = vmatpush1.bf16.msra.mxu1 %v2539_v13  ;;  %v2548_v22 = vpack.c.bf16 %v57_v20, %v53_v19  ;;  %v62_v24 = vld [vmem:[#allocation2 + $0x88] sm:$0xff]  ;;  %v2552_v26 = vpack.c.bf16 %v59_v23, %v55_v21  ;;  %v64_v28 = vld [vmem:[#allocation2 + $0x98] sm:$0xff]  ;;  %v61_v30 = vld [vmem:[#allocation2 + $0x80] sm:$0xff]  ;;  %p2459_p5 = por %p2458_p4, %p2457_p3 }
  0x2b   :  { %v66_v25 = vld [vmem:[#allocation2 + $0xa8] sm:$0xff]  ;;  %1764 = vmatprep.subr.bf16.mxu0 %v2543_v17  ;;  %v68_v29 = vld [vmem:[#allocation2 + $0xb8] sm:$0xff]  ;;  %v65_v32 = vld [vmem:[#allocation2 + $0xa0] sm:$0xff] }
  0x2c   :  { %1796 = vmatprep.subr.bf16.mxu1 %v2545_v18  ;;  %v2554_v27 = vpack.c.bf16 %v66_v25, %v62_v24  ;;  %v2556_v31 = vpack.c.bf16 %v68_v29, %v64_v28  ;;  %v63_v33 = vld [vmem:[#allocation2 + $0x90] sm:$0xff]  ;;  %v2559_v35 = vpack.c.bf16 %v65_v32, %v61_v30  ;;  %v70_v36 = vld [vmem:[#allocation2 + $0xc8] sm:$0xff]  ;;  %v72_v38 = vld [vmem:[#allocation2 + $0xd8] sm:$0xff]  ;;  %p2460_p6 = pnand %p2459_p5, %p2453_p2 }
  0x2d   :  { %v67_v34 = vld [vmem:[#allocation2 + $0xb0] sm:$0xff]  ;;  %v74_v37 = vld [vmem:[#allocation2 + $0xe8] sm:$0xff]  ;;  %v76_v41 = vld [vmem:[#allocation2 + $0xf8] sm:$0xff] }
  0x2e   :  { %1766 = vmatpush1.bf16.msra.mxu0 %v2548_v22  ;;  %1798 = vmatpush1.bf16.msra.mxu1 %v2552_v26  ;;  %v2563_v39 = vpack.c.bf16 %v67_v34, %v63_v33  ;;  %v2565_v40 = vpack.c.bf16 %v74_v37, %v70_v36  ;;  %v69_v42 = vld [vmem:[#allocation2 + $0xc0] sm:$0xff]  ;;  %v2568_v44 = vpack.c.bf16 %v76_v41, %v72_v38  ;;  %v71_v45 = vld [vmem:[#allocation2 + $0xd0] sm:$0xff]  ;;  %v78_v47 = vld [vmem:[#allocation2 + $0x108] sm:$0xff] }
  0x2f   :  { %1768 = vmatprep.subr.bf16.mxu0 %v2554_v27  ;;  %v73_v43 = vld [vmem:[#allocation2 + $0xe0] sm:$0xff]  ;;  %1800 = vmatprep.subr.bf16.mxu1 %v2556_v31  ;;  %v75_v46 = vld [vmem:[#allocation2 + $0xf0] sm:$0xff]  ;;  %v82_v48 = vld [vmem:[#allocation2 + $0x128] sm:$0xff] }
  0x30   :  { %v80_v49 = vld [vmem:[#allocation2 + $0x118] sm:$0xff]  ;;  %v2571_v51 = vpack.c.bf16 %v73_v43, %v69_v42  ;;  %v2575_v52 = vpack.c.bf16 %v75_v46, %v71_v45  ;;  %v2577_v53 = vpack.c.bf16 %v82_v48, %v78_v47  ;;  %v77_v54 = vld [vmem:[#allocation2 + $0x100] sm:$0xff]  ;;  %v79_v56 = vld [vmem:[#allocation2 + $0x110] sm:$0xff] }
  0x31   :  { %v84_v50 = vld [vmem:[#allocation2 + $0x138] sm:$0xff]  ;;  %v81_v55 = vld [vmem:[#allocation2 + $0x120] sm:$0xff]  ;;  %v83_v58 = vld [vmem:[#allocation2 + $0x130] sm:$0xff] }
  0x32   :  { %1770 = vmatpush1.bf16.msra.mxu0 %v2559_v35  ;;  %1802 = vmatpush1.bf16.msra.mxu1 %v2563_v39  ;;  %v2580_v57 = vpack.c.bf16 %v84_v50, %v80_v49  ;;  %v86_v59 = vld [vmem:[#allocation2 + $0x148] sm:$0xff]  ;;  %v88_v61 = vld [vmem:[#allocation2 + $0x158] sm:$0xff]  ;;  %v2583_v63 = vpack.c.bf16 %v81_v55, %v77_v54  ;;  %v2587_v1 = vpack.c.bf16 %v83_v58, %v79_v56  ;;  %v85_v3 = vld [vmem:[#allocation2 + $0x140] sm:$0xff]  ;;  %v2485_v49 = vmov 1983009808  }
  0x33   :  { %1772 = vmatprep.subr.bf16.mxu0 %v2565_v40  ;;  %1804 = vmatprep.subr.bf16.mxu1 %v2568_v44  ;;  %v90_v60 = vld [vmem:[#allocation2 + $0x168] sm:$0xff]  ;;  %v92_v62 = vld [vmem:[#allocation2 + $0x178] sm:$0xff]  ;;  %v89_v5 = vld [vmem:[#allocation2 + $0x160] sm:$0xff]  ;;  %v261_v50 = vunpack.c.l.s4 %v2485_v49  ;;  %v263_v54 = vlaneseq }
  0x34   :  { %v2589_v2 = vpack.c.bf16 %v90_v60, %v86_v59  ;;  %v87_v6 = vld [vmem:[#allocation2 + $0x150] sm:$0xff]  ;;  %v2592_v7 = vpack.c.bf16 %v92_v62, %v88_v61  ;;  %v94_v11 = vld [vmem:[#allocation2 + $0x188] sm:$0xff]  ;;  %v96_v14 = vld [vmem:[#allocation2 + $0x198] sm:$0xff]  ;;  %v2595_v16 = vpack.c.bf16 %v89_v5, %v85_v3 }
  0x35   :  { %v91_v10 = vld [vmem:[#allocation2 + $0x170] sm:$0xff]  ;;  %v98_v12 = vld [vmem:[#allocation2 + $0x1a8] sm:$0xff]  ;;  %v100_v15 = vld [vmem:[#allocation2 + $0x1b8] sm:$0xff]  ;;  %v262_v55 = vunpack.c.0.s8 %v261_v50  ;;  %v264_v56 = vshrl.u32 %v263_v54, 7 }
  0x36   :  { %1774 = vmatpush1.bf16.msra.mxu0 %v2571_v51  ;;  %1806 = vmatpush1.bf16.msra.mxu1 %v2575_v52  ;;  %v2599_v19 = vpack.c.bf16 %v91_v10, %v87_v6  ;;  %v2601_v20 = vpack.c.bf16 %v98_v12, %v94_v11  ;;  %v93_v21 = vld [vmem:[#allocation2 + $0x180] sm:$0xff]  ;;  %v95_v24 = vld [vmem:[#allocation2 + $0x190] sm:$0xff]  ;;  %v2604_v25 = vpack.c.bf16 %v100_v15, %v96_v14  ;;  %v102_v29 = vld [vmem:[#allocation2 + $0x1c8] sm:$0xff] }
  0x37   :  { %1776 = vmatprep.subr.bf16.mxu0 %v2577_v53  ;;  %1808 = vmatprep.subr.bf16.mxu1 %v2580_v57  ;;  %v97_v23 = vld [vmem:[#allocation2 + $0x1a0] sm:$0xff]  ;;  %v99_v28 = vld [vmem:[#allocation2 + $0x1b0] sm:$0xff]  ;;  %v106_v30 = vld [vmem:[#allocation2 + $0x1e8] sm:$0xff]  ;;  %v2664_v59 = vsub.s32 %v262_v55, %v264_v56 }
  0x38   :  { %v104_v32 = vld [vmem:[#allocation2 + $0x1d8] sm:$0xff]  ;;  %v2607_v34 = vpack.c.bf16 %v97_v23, %v93_v21  ;;  %v2611_v36 = vpack.c.bf16 %v99_v28, %v95_v24  ;;  %v2613_v37 = vpack.c.bf16 %v106_v30, %v102_v29  ;;  %v101_v38 = vld [vmem:[#allocation2 + $0x1c0] sm:$0xff]  ;;  %v103_v43 = vld [vmem:[#allocation2 + $0x1d0] sm:$0xff] }
  0x39   :  { %v108_v33 = vld [vmem:[#allocation2 + $0x1f8] sm:$0xff]  ;;  %v105_v41 = vld [vmem:[#allocation2 + $0x1e0] sm:$0xff]  ;;  %v107_v45 = vld [vmem:[#allocation2 + $0x1f0] sm:$0xff] }
  0x3a   :  { %1778 = vmatpush1.bf16.msra.mxu0 %v2583_v63  ;;  %1810 = vmatpush1.bf16.msra.mxu1 %v2587_v1  ;;  %v2616_v42 = vpack.c.bf16 %v108_v33, %v104_v32  ;;  %v2619_v46 = vpack.c.bf16 %v105_v41, %v101_v38  ;;  %v2623_v47 = vpack.c.bf16 %v107_v45, %v103_v43  ;;  %v109_v48 = vld [vmem:[#allocation3] sm:$0x3]  ;;  %v111_v11 = vld [vmem:[#allocation6] sm:$0xff]  ;;  %v110_v45 = vld [vmem:[#allocation4] sm:$0x3] }
  0x3b   :  { %1780 = vmatprep.subr.bf16.mxu0 %v2589_v2  ;;  %1812 = vmatprep.subr.bf16.mxu1 %v2592_v7 }
  0x3e   :  { %1782 = vmatpush1.bf16.msra.mxu0 %v2595_v16  ;;  %1814 = vmatpush1.bf16.msra.mxu1 %v2599_v19 }
  0x3f   :  { %1784 = vmatprep.subr.bf16.mxu0 %v2601_v20  ;;  %1816 = vmatprep.subr.bf16.mxu1 %v2604_v25 }
  0x42   :  { %1786 = vmatpush1.bf16.msra.mxu0 %v2607_v34  ;;  %1818 = vmatpush1.bf16.msra.mxu1 %v2611_v36 }
  0x43   :  { %1788 = vmatprep.subr.bf16.mxu0 %v2613_v37  ;;  %1820 = vmatprep.subr.bf16.mxu1 %v2616_v42 }
  0x46   :  { %1790 = vmatpush1.bf16.msra.mxu0 %v2619_v46  ;;  %1822 = vmatpush1.bf16.msra.mxu1 %v2623_v47 }
  0x47   :  { %1824 = vmatprep.subr.bf16.mxu0 %v2532_v4  ;;  %1856 = vmatprep.subr.bf16.mxu1 %v2534_v8 }
  0x49   :  { %177 = vmatmul.mubr.f32.vlgmr.msra.gmra.mrb[0].mxu0 %v109_v48  ;;  %248 = vmatmul.mubr.f32.vlgmr.msra.gmra.mrb[0].mxu1 %v109_v48 }
  0x4a   :  { %1826 = vmatpush1.bf16.msra.mxu0 %v2536_v9  ;;  %1858 = vmatpush1.bf16.msra.mxu1 %v2539_v13 }
  0x4b   :  { %1828 = vmatprep.subr.bf16.mxu0 %v2543_v17  ;;  %1860 = vmatprep.subr.bf16.mxu1 %v2545_v18 }
  0x4c   :  { %375 = vmatprep.mubr.f32.mxu0 %v2484_v0  ;;  %446 = vmatprep.mubr.f32.mxu1 %v2484_v0 }
  0x4e   :  { %1830 = vmatpush1.bf16.msra.mxu0 %v2548_v22  ;;  %1862 = vmatpush1.bf16.msra.mxu1 %v2552_v26 }
  0x4f   :  { %1832 = vmatprep.subr.bf16.mxu0 %v2554_v27  ;;  %1864 = vmatprep.subr.bf16.mxu1 %v2556_v31 }
  0x52   :  { %1834 = vmatpush1.bf16.msra.mxu0 %v2559_v35  ;;  %1866 = vmatpush1.bf16.msra.mxu1 %v2563_v39 }
  0x53   :  { %1836 = vmatprep.subr.bf16.mxu0 %v2565_v40  ;;  %1868 = vmatprep.subr.bf16.mxu1 %v2568_v44 }
  0x56   :  { %1838 = vmatpush1.bf16.msra.mxu0 %v2571_v51  ;;  %1870 = vmatpush1.bf16.msra.mxu1 %v2575_v52 }
  0x57   :  { %1840 = vmatprep.subr.bf16.mxu0 %v2577_v53  ;;  %1872 = vmatprep.subr.bf16.mxu1 %v2580_v57 }
  0x5a   :  { %1842 = vmatpush1.bf16.msra.mxu0 %v2583_v63  ;;  %1874 = vmatpush1.bf16.msra.mxu1 %v2587_v1 }
  0x5b   :  { %1844 = vmatprep.subr.bf16.mxu0 %v2589_v2  ;;  %1876 = vmatprep.subr.bf16.mxu1 %v2592_v7 }
  0x5e   :  { %1846 = vmatpush1.bf16.msra.mxu0 %v2595_v16  ;;  %1878 = vmatpush1.bf16.msra.mxu1 %v2599_v19 }
  0x5f   :  { %1848 = vmatprep.subr.bf16.mxu0 %v2601_v20  ;;  %1880 = vmatprep.subr.bf16.mxu1 %v2604_v25 }
  0x62   :  { %1850 = vmatpush1.bf16.msra.mxu0 %v2607_v34  ;;  %1882 = vmatpush1.bf16.msra.mxu1 %v2611_v36 }
  0x63   :  { %1852 = vmatprep.subr.bf16.mxu0 %v2613_v37  ;;  %1884 = vmatprep.subr.bf16.mxu1 %v2616_v42 }
  0x66   :  { %1854 = vmatpush1.bf16.msra.mxu0 %v2619_v46  ;;  %1886 = vmatpush1.bf16.msra.mxu1 %v2623_v47 }
  0x67   :  { %1888 = vmatprep.subr.bf16.mxu0 %v2532_v4  ;;  %1920 = vmatprep.subr.bf16.mxu1 %v2534_v8 }
 0x11c   :  { %v178_v58 = vpop.f32.mrb[0].mxu0  ;;  %v249_v60 = vpop.f32.mrb[0].mxu1 }
 0x11d   :  { %v180_v61 = vpop.f32.mrb[1].mxu0  ;;  %v251_v3 = vpop.f32.mrb[1].mxu1 }
 0x11e   :  { %v258_v62 = vcombine.low %v178_v58, %v180_v61  ;;  %v259_v5 = vcombine.low %v249_v60, %v251_v3 }
 0x120   :  { %v266_v6 = vrot.slane %v258_v62, %v2664_v59  ;;  %v273_v10 = vrot.slane %v259_v5, %v2664_v59 }
 0x122   :  { %v274_v12 = vcombine.low %v266_v6, %v273_v10 }
 0x124   :  { %v276_v14 = vadd.f32 %v274_v12, %v111_v11 }
 0x126   :  { %v1734_v15 = vmul.f32 -1.442695, %v276_v14  ;;  %v284_v21 = vrot.slane %v276_v14, 2  ;;  %v295_v24 = vrot.slane %v276_v14, 6  ;;  %v292_v30 = vrot.slane %v276_v14, 4 }
 0x128   :  { %2280 = vpow2.f32 %v1734_v15  ;;  %v1735_v23 = vmul.f32 -1.442695, %v284_v21  ;;  %v1736_v28 = vmul.f32 -1.442695, %v295_v24  ;;  %v310_v15 = vld [vmem:[#allocation6 + $0x8] sm:$0xff] }
 0x12a   :  { %2282 = vpow2.f32 %v1735_v23 }
 0x12b   :  { %2284 = vpow2.f32 %v1736_v28 }
 0x132   :  { %v2281_v29 = vpop.eup %2280 }
 0x133   :  { %v280_v32 = vadd.f32 1.0, %v2281_v29 }
 0x134   :  { %v2283_v33 = vpop.eup %2282 }
 0x135   :  { %2286 = vrcp.f32 %v280_v32  ;;  %v289_v38 = vadd.f32 1.0, %v2283_v33  ;;  %v2285_v41 = vpop.eup %2284 }
 0x136   :  { %2288 = vtanh.f32 %v292_v30  ;;  %v300_v50 = vadd.f32 1.0, %v2285_v41 }
 0x137   :  { %2290 = vrcp.f32 %v289_v38 }
 0x138   :  { %2292 = vrcp.f32 %v300_v50 }
 0x13f   :  { %v2287_v43 = vpop.eup %2286 }
 0x140   :  { %v2289_v48 = vpop.eup %2288 }
 0x141   :  { %v2291_v49 = vpop.eup %2290  ;;  %v304_v55 = vmul.f32 %v2289_v48, %v2287_v43 }
 0x142   :  { %v303_v54 = vmul.f32 %v2291_v49, %v110_v45  ;;  %v2293_v58 = vpop.eup %2292 }
 0x144   :  { %v2668_v56 = vadd.f32 %v304_v55, %v303_v54 }
 0x146   :  { %2294 = vtanh.f32 %v2668_v56 }
 0x150   :  { %v2295_v60 = vpop.eup %2294 }
 0x151   :  { %v307_v61 = vmul.f32 %v2295_v60, %v2293_v58 }
 0x153   :  { %308 = vst [vmem:[#allocation9] sm:$0x3] %v307_v61  ;;  %376 = vmatmul.mubr.f32.vlgmr.msra.gmra.mrb[2].mxu0 %v307_v61  ;;  %447 = vmatmul.mubr.f32.vlgmr.msra.gmra.mrb[2].mxu1 %v307_v61 }
 0x154   :  { %1890 = vmatpush1.bf16.msra.mxu0 %v2536_v9  ;;  %1922 = vmatpush1.bf16.msra.mxu1 %v2539_v13 }
 0x155   :  { %1892 = vmatprep.subr.bf16.mxu0 %v2543_v17  ;;  %1924 = vmatprep.subr.bf16.mxu1 %v2545_v18 }
 0x156   :  { %575 = vmatprep.mubr.f32.mxu0 %v2484_v0  ;;  %646 = vmatprep.mubr.f32.mxu1 %v2484_v0 }
 0x158   :  { %1894 = vmatpush1.bf16.msra.mxu0 %v2548_v22  ;;  %1926 = vmatpush1.bf16.msra.mxu1 %v2552_v26 }
 0x159   :  { %1896 = vmatprep.subr.bf16.mxu0 %v2554_v27  ;;  %1928 = vmatprep.subr.bf16.mxu1 %v2556_v31 }
 0x15c   :  { %1898 = vmatpush1.bf16.msra.mxu0 %v2559_v35  ;;  %1930 = vmatpush1.bf16.msra.mxu1 %v2563_v39 }
 0x15d   :  { %1900 = vmatprep.subr.bf16.mxu0 %v2565_v40  ;;  %1932 = vmatprep.subr.bf16.mxu1 %v2568_v44 }
 0x160   :  { %1902 = vmatpush1.bf16.msra.mxu0 %v2571_v51  ;;  %1934 = vmatpush1.bf16.msra.mxu1 %v2575_v52 }
 0x161   :  { %1904 = vmatprep.subr.bf16.mxu0 %v2577_v53  ;;  %1936 = vmatprep.subr.bf16.mxu1 %v2580_v57 }
 0x164   :  { %1906 = vmatpush1.bf16.msra.mxu0 %v2583_v63  ;;  %1938 = vmatpush1.bf16.msra.mxu1 %v2587_v1 }
 0x165   :  { %1908 = vmatprep.subr.bf16.mxu0 %v2589_v2  ;;  %1940 = vmatprep.subr.bf16.mxu1 %v2592_v7 }
 0x168   :  { %1910 = vmatpush1.bf16.msra.mxu0 %v2595_v16  ;;  %1942 = vmatpush1.bf16.msra.mxu1 %v2599_v19 }
 0x169   :  { %1912 = vmatprep.subr.bf16.mxu0 %v2601_v20  ;;  %1944 = vmatprep.subr.bf16.mxu1 %v2604_v25 }
 0x16c   :  { %1914 = vmatpush1.bf16.msra.mxu0 %v2607_v34  ;;  %1946 = vmatpush1.bf16.msra.mxu1 %v2611_v36 }
 0x16d   :  { %1916 = vmatprep.subr.bf16.mxu0 %v2613_v37  ;;  %1948 = vmatprep.subr.bf16.mxu1 %v2616_v42 }
 0x170   :  { %1918 = vmatpush1.bf16.msra.mxu0 %v2619_v46  ;;  %1950 = vmatpush1.bf16.msra.mxu1 %v2623_v47 }
 0x171   :  { %1952 = vmatprep.subr.bf16.mxu0 %v2532_v4  ;;  %1984 = vmatprep.subr.bf16.mxu1 %v2534_v8 }
 0x226   :  { %v377_v62 = vpop.f32.mrb[2].mxu0  ;;  %v448_v3 = vpop.f32.mrb[2].mxu1 }
 0x227   :  { %v379_v5 = vpop.f32.mrb[3].mxu0  ;;  %v450_v6 = vpop.f32.mrb[3].mxu1 }
 0x228   :  { %v457_v10 = vcombine.low %v377_v62, %v379_v5  ;;  %v458_v11 = vcombine.low %v448_v3, %v450_v6 }
 0x22a   :  { %v465_v12 = vrot.slane %v457_v10, %v2664_v59  ;;  %v472_v14 = vrot.slane %v458_v11, %v2664_v59 }
 0x22c   :  { %v473_v21 = vcombine.low %v465_v12, %v472_v14 }
 0x22e   :  { %v475_v23 = vadd.f32 %v473_v21, %v310_v15 }
 0x230   :  { %v1737_v24 = vmul.f32 -1.442695, %v475_v23  ;;  %v483_v28 = vrot.slane %v475_v23, 2  ;;  %v494_v30 = vrot.slane %v475_v23, 6  ;;  %v491_v38 = vrot.slane %v475_v23, 4  ;;  %v510_v23 = vld [vmem:[#allocation6 + $0x10] sm:$0xff] }
 0x232   :  { %2296 = vpow2.f32 %v1737_v24  ;;  %v1738_v29 = vmul.f32 -1.442695, %v483_v28  ;;  %v1739_v32 = vmul.f32 -1.442695, %v494_v30 }
 0x234   :  { %2298 = vpow2.f32 %v1738_v29 }
 0x235   :  { %2300 = vpow2.f32 %v1739_v32 }
 0x23c   :  { %v2297_v33 = vpop.eup %2296 }
 0x23d   :  { %v479_v41 = vadd.f32 1.0, %v2297_v33 }
 0x23e   :  { %v2299_v43 = vpop.eup %2298 }
 0x23f   :  { %2302 = vrcp.f32 %v479_v41  ;;  %v488_v45 = vadd.f32 1.0, %v2299_v43  ;;  %v2301_v48 = vpop.eup %2300 }
 0x240   :  { %2304 = vtanh.f32 %v491_v38  ;;  %v499_v55 = vadd.f32 1.0, %v2301_v48 }
 0x241   :  { %2306 = vrcp.f32 %v488_v45 }
 0x242   :  { %2308 = vrcp.f32 %v499_v55 }
 0x249   :  { %v2303_v49 = vpop.eup %2302 }
 0x24a   :  { %v2305_v50 = vpop.eup %2304 }
 0x24b   :  { %v2307_v54 = vpop.eup %2306  ;;  %v503_v60 = vmul.f32 %v2305_v50, %v2303_v49 }
 0x24c   :  { %v502_v58 = vmul.f32 %v2307_v54, %v2668_v56  ;;  %v2309_v62 = vpop.eup %2308 }
 0x24e   :  { %v2708_v61 = vadd.f32 %v503_v60, %v502_v58 }
 0x250   :  { %2310 = vtanh.f32 %v2708_v61 }
 0x25a   :  { %v2311_v3 = vpop.eup %2310 }
 0x25b   :  { %v506_v5 = vmul.f32 %v2311_v3, %v2309_v62 }
 0x25d   :  { %508 = vst [vmem:[#allocation9 + $0x2] sm:$0x3] %v506_v5  ;;  %576 = vmatmul.mubr.f32.vlgmr.msra.gmra.mrb[4].mxu0 %v506_v5  ;;  %647 = vmatmul.mubr.f32.vlgmr.msra.gmra.mrb[4].mxu1 %v506_v5 }
 0x25e   :  { %1954 = vmatpush1.bf16.msra.mxu0 %v2536_v9  ;;  %1986 = vmatpush1.bf16.msra.mxu1 %v2539_v13 }
 0x25f   :  { %1956 = vmatprep.subr.bf16.mxu0 %v2543_v17  ;;  %1988 = vmatprep.subr.bf16.mxu1 %v2545_v18 }
 0x260   :  { %775 = vmatprep.mubr.f32.mxu0 %v2484_v0  ;;  %846 = vmatprep.mubr.f32.mxu1 %v2484_v0 }
 0x262   :  { %1958 = vmatpush1.bf16.msra.mxu0 %v2548_v22  ;;  %1990 = vmatpush1.bf16.msra.mxu1 %v2552_v26 }
 0x263   :  { %1960 = vmatprep.subr.bf16.mxu0 %v2554_v27  ;;  %1992 = vmatprep.subr.bf16.mxu1 %v2556_v31 }
 0x266   :  { %1962 = vmatpush1.bf16.msra.mxu0 %v2559_v35  ;;  %1994 = vmatpush1.bf16.msra.mxu1 %v2563_v39 }
 0x267   :  { %1964 = vmatprep.subr.bf16.mxu0 %v2565_v40  ;;  %1996 = vmatprep.subr.bf16.mxu1 %v2568_v44 }
 0x26a   :  { %1966 = vmatpush1.bf16.msra.mxu0 %v2571_v51  ;;  %1998 = vmatpush1.bf16.msra.mxu1 %v2575_v52 }
 0x26b   :  { %1968 = vmatprep.subr.bf16.mxu0 %v2577_v53  ;;  %2000 = vmatprep.subr.bf16.mxu1 %v2580_v57 }
 0x26e   :  { %1970 = vmatpush1.bf16.msra.mxu0 %v2583_v63  ;;  %2002 = vmatpush1.bf16.msra.mxu1 %v2587_v1 }
 0x26f   :  { %1972 = vmatprep.subr.bf16.mxu0 %v2589_v2  ;;  %2004 = vmatprep.subr.bf16.mxu1 %v2592_v7 }
 0x272   :  { %1974 = vmatpush1.bf16.msra.mxu0 %v2595_v16  ;;  %2006 = vmatpush1.bf16.msra.mxu1 %v2599_v19 }
 0x273   :  { %1976 = vmatprep.subr.bf16.mxu0 %v2601_v20  ;;  %2008 = vmatprep.subr.bf16.mxu1 %v2604_v25 }
 0x276   :  { %1978 = vmatpush1.bf16.msra.mxu0 %v2607_v34  ;;  %2010 = vmatpush1.bf16.msra.mxu1 %v2611_v36 }
 0x277   :  { %1980 = vmatprep.subr.bf16.mxu0 %v2613_v37  ;;  %2012 = vmatprep.subr.bf16.mxu1 %v2616_v42 }
 0x27a   :  { %1982 = vmatpush1.bf16.msra.mxu0 %v2619_v46  ;;  %2014 = vmatpush1.bf16.msra.mxu1 %v2623_v47 }
 0x27b   :  { %2016 = vmatprep.subr.bf16.mxu0 %v2532_v4  ;;  %2048 = vmatprep.subr.bf16.mxu1 %v2534_v8 }
 0x330   :  { %v577_v56 = vpop.f32.mrb[4].mxu0  ;;  %v648_v6 = vpop.f32.mrb[4].mxu1 }
 0x331   :  { %v579_v10 = vpop.f32.mrb[5].mxu0  ;;  %v650_v11 = vpop.f32.mrb[5].mxu1 }
 0x332   :  { %v657_v12 = vcombine.low %v577_v56, %v579_v10  ;;  %v658_v14 = vcombine.low %v648_v6, %v650_v11 }
 0x334   :  { %v665_v15 = vrot.slane %v657_v12, %v2664_v59  ;;  %v672_v21 = vrot.slane %v658_v14, %v2664_v59 }
 0x336   :  { %v673_v24 = vcombine.low %v665_v15, %v672_v21 }
 0x338   :  { %v675_v28 = vadd.f32 %v673_v24, %v510_v23 }
 0x33a   :  { %v1740_v29 = vmul.f32 -1.442695, %v675_v28  ;;  %v683_v30 = vrot.slane %v675_v28, 2  ;;  %v694_v33 = vrot.slane %v675_v28, 6  ;;  %v691_v43 = vrot.slane %v675_v28, 4  ;;  %v710_v28 = vld [vmem:[#allocation6 + $0x18] sm:$0xff] }
 0x33c   :  { %2312 = vpow2.f32 %v1740_v29  ;;  %v1741_v32 = vmul.f32 -1.442695, %v683_v30  ;;  %v1742_v38 = vmul.f32 -1.442695, %v694_v33 }
 0x33e   :  { %2314 = vpow2.f32 %v1741_v32 }
 0x33f   :  { %2316 = vpow2.f32 %v1742_v38 }
 0x346   :  { %v2313_v41 = vpop.eup %2312 }
 0x347   :  { %v679_v45 = vadd.f32 1.0, %v2313_v41 }
 0x348   :  { %v2315_v48 = vpop.eup %2314 }
 0x349   :  { %2318 = vrcp.f32 %v679_v45  ;;  %v688_v49 = vadd.f32 1.0, %v2315_v48  ;;  %v2317_v50 = vpop.eup %2316 }
 0x34a   :  { %2320 = vtanh.f32 %v691_v43  ;;  %v699_v60 = vadd.f32 1.0, %v2317_v50 }
 0x34b   :  { %2322 = vrcp.f32 %v688_v49 }
 0x34c   :  { %2324 = vrcp.f32 %v699_v60 }
 0x353   :  { %v2319_v54 = vpop.eup %2318 }
 0x354   :  { %v2321_v55 = vpop.eup %2320 }
 0x355   :  { %v2323_v58 = vpop.eup %2322  ;;  %v703_v3 = vmul.f32 %v2321_v55, %v2319_v54 }
 0x356   :  { %v702_v62 = vmul.f32 %v2323_v58, %v2708_v61  ;;  %v2325_v56 = vpop.eup %2324 }
 0x358   :  { %v2748_v5 = vadd.f32 %v703_v3, %v702_v62 }
 0x35a   :  { %2326 = vtanh.f32 %v2748_v5 }
 0x364   :  { %v2327_v6 = vpop.eup %2326 }
 0x365   :  { %v706_v10 = vmul.f32 %v2327_v6, %v2325_v56 }
 0x367   :  { %708 = vst [vmem:[#allocation9 + $0x4] sm:$0x3] %v706_v10  ;;  %776 = vmatmul.mubr.f32.vlgmr.msra.gmra.mrb[6].mxu0 %v706_v10  ;;  %847 = vmatmul.mubr.f32.vlgmr.msra.gmra.mrb[6].mxu1 %v706_v10 }
 0x368   :  { %2018 = vmatpush1.bf16.msra.mxu0 %v2536_v9  ;;  %2050 = vmatpush1.bf16.msra.mxu1 %v2539_v13 }
 0x369   :  { %2020 = vmatprep.subr.bf16.mxu0 %v2543_v17  ;;  %2052 = vmatprep.subr.bf16.mxu1 %v2545_v18 }
 0x36a   :  { %975 = vmatprep.mubr.f32.mxu0 %v2484_v0  ;;  %1046 = vmatprep.mubr.f32.mxu1 %v2484_v0 }
 0x36c   :  { %2022 = vmatpush1.bf16.msra.mxu0 %v2548_v22  ;;  %2054 = vmatpush1.bf16.msra.mxu1 %v2552_v26 }
 0x36d   :  { %2024 = vmatprep.subr.bf16.mxu0 %v2554_v27  ;;  %2056 = vmatprep.subr.bf16.mxu1 %v2556_v31 }
 0x370   :  { %2026 = vmatpush1.bf16.msra.mxu0 %v2559_v35  ;;  %2058 = vmatpush1.bf16.msra.mxu1 %v2563_v39 }
 0x371   :  { %2028 = vmatprep.subr.bf16.mxu0 %v2565_v40  ;;  %2060 = vmatprep.subr.bf16.mxu1 %v2568_v44 }
 0x374   :  { %2030 = vmatpush1.bf16.msra.mxu0 %v2571_v51  ;;  %2062 = vmatpush1.bf16.msra.mxu1 %v2575_v52 }
 0x375   :  { %2032 = vmatprep.subr.bf16.mxu0 %v2577_v53  ;;  %2064 = vmatprep.subr.bf16.mxu1 %v2580_v57 }
 0x378   :  { %2034 = vmatpush1.bf16.msra.mxu0 %v2583_v63  ;;  %2066 = vmatpush1.bf16.msra.mxu1 %v2587_v1 }
 0x379   :  { %2036 = vmatprep.subr.bf16.mxu0 %v2589_v2  ;;  %2068 = vmatprep.subr.bf16.mxu1 %v2592_v7 }
 0x37c   :  { %2038 = vmatpush1.bf16.msra.mxu0 %v2595_v16  ;;  %2070 = vmatpush1.bf16.msra.mxu1 %v2599_v19 }
 0x37d   :  { %2040 = vmatprep.subr.bf16.mxu0 %v2601_v20  ;;  %2072 = vmatprep.subr.bf16.mxu1 %v2604_v25 }
 0x380   :  { %2042 = vmatpush1.bf16.msra.mxu0 %v2607_v34  ;;  %2074 = vmatpush1.bf16.msra.mxu1 %v2611_v36 }
 0x381   :  { %2044 = vmatprep.subr.bf16.mxu0 %v2613_v37  ;;  %2076 = vmatprep.subr.bf16.mxu1 %v2616_v42 }
 0x384   :  { %2046 = vmatpush1.bf16.msra.mxu0 %v2619_v46  ;;  %2078 = vmatpush1.bf16.msra.mxu1 %v2623_v47 }
 0x385   :  { %2080 = vmatprep.subr.bf16.mxu0 %v2532_v4  ;;  %2112 = vmatprep.subr.bf16.mxu1 %v2534_v8 }
 0x43a   :  { %v777_v61 = vpop.f32.mrb[6].mxu0  ;;  %v848_v11 = vpop.f32.mrb[6].mxu1 }
 0x43b   :  { %v779_v12 = vpop.f32.mrb[7].mxu0  ;;  %v850_v14 = vpop.f32.mrb[7].mxu1 }
 0x43c   :  { %v857_v15 = vcombine.low %v777_v61, %v779_v12  ;;  %v858_v21 = vcombine.low %v848_v11, %v850_v14 }
 0x43e   :  { %v865_v23 = vrot.slane %v857_v15, %v2664_v59  ;;  %v872_v24 = vrot.slane %v858_v21, %v2664_v59 }
 0x440   :  { %v873_v29 = vcombine.low %v865_v23, %v872_v24 }
 0x442   :  { %v875_v30 = vadd.f32 %v873_v29, %v710_v28 }
 0x444   :  { %v1743_v32 = vmul.f32 -1.442695, %v875_v30  ;;  %v883_v33 = vrot.slane %v875_v30, 2  ;;  %v894_v41 = vrot.slane %v875_v30, 6  ;;  %v891_v48 = vrot.slane %v875_v30, 4  ;;  %v910_v30 = vld [vmem:[#allocation6 + $0x20] sm:$0xff] }
 0x446   :  { %2328 = vpow2.f32 %v1743_v32  ;;  %v1744_v38 = vmul.f32 -1.442695, %v883_v33  ;;  %v1745_v43 = vmul.f32 -1.442695, %v894_v41 }
 0x448   :  { %2330 = vpow2.f32 %v1744_v38 }
 0x449   :  { %2332 = vpow2.f32 %v1745_v43 }
 0x450   :  { %v2329_v45 = vpop.eup %2328 }
 0x451   :  { %v879_v49 = vadd.f32 1.0, %v2329_v45 }
 0x452   :  { %v2331_v50 = vpop.eup %2330 }
 0x453   :  { %2334 = vrcp.f32 %v879_v49  ;;  %v888_v54 = vadd.f32 1.0, %v2331_v50  ;;  %v2333_v55 = vpop.eup %2332 }
 0x454   :  { %2336 = vtanh.f32 %v891_v48  ;;  %v899_v3 = vadd.f32 1.0, %v2333_v55 }
 0x455   :  { %2338 = vrcp.f32 %v888_v54 }
 0x456   :  { %2340 = vrcp.f32 %v899_v3 }
 0x45d   :  { %v2335_v58 = vpop.eup %2334 }
 0x45e   :  { %v2337_v60 = vpop.eup %2336 }
 0x45f   :  { %v2339_v62 = vpop.eup %2338  ;;  %v903_v6 = vmul.f32 %v2337_v60, %v2335_v58 }
 0x460   :  { %v902_v56 = vmul.f32 %v2339_v62, %v2748_v5  ;;  %v2341_v61 = vpop.eup %2340 }
 0x462   :  { %v2788_v10 = vadd.f32 %v903_v6, %v902_v56 }
 0x464   :  { %2342 = vtanh.f32 %v2788_v10 }
 0x46e   :  { %v2343_v11 = vpop.eup %2342 }
 0x46f   :  { %v906_v12 = vmul.f32 %v2343_v11, %v2341_v61 }
 0x471   :  { %908 = vst [vmem:[#allocation9 + $0x6] sm:$0x3] %v906_v12  ;;  %976 = vmatmul.mubr.f32.vlgmr.msra.gmra.mrb[8].mxu0 %v906_v12  ;;  %1047 = vmatmul.mubr.f32.vlgmr.msra.gmra.mrb[8].mxu1 %v906_v12 }
 0x472   :  { %2082 = vmatpush1.bf16.msra.mxu0 %v2536_v9  ;;  %2114 = vmatpush1.bf16.msra.mxu1 %v2539_v13 }
 0x473   :  { %2084 = vmatprep.subr.bf16.mxu0 %v2543_v17  ;;  %2116 = vmatprep.subr.bf16.mxu1 %v2545_v18 }
 0x474   :  { %1175 = vmatprep.mubr.f32.mxu0 %v2484_v0  ;;  %1246 = vmatprep.mubr.f32.mxu1 %v2484_v0 }
 0x476   :  { %2086 = vmatpush1.bf16.msra.mxu0 %v2548_v22  ;;  %2118 = vmatpush1.bf16.msra.mxu1 %v2552_v26 }
 0x477   :  { %2088 = vmatprep.subr.bf16.mxu0 %v2554_v27  ;;  %2120 = vmatprep.subr.bf16.mxu1 %v2556_v31 }
 0x47a   :  { %2090 = vmatpush1.bf16.msra.mxu0 %v2559_v35  ;;  %2122 = vmatpush1.bf16.msra.mxu1 %v2563_v39 }
 0x47b   :  { %2092 = vmatprep.subr.bf16.mxu0 %v2565_v40  ;;  %2124 = vmatprep.subr.bf16.mxu1 %v2568_v44 }
 0x47e   :  { %2094 = vmatpush1.bf16.msra.mxu0 %v2571_v51  ;;  %2126 = vmatpush1.bf16.msra.mxu1 %v2575_v52 }
 0x47f   :  { %2096 = vmatprep.subr.bf16.mxu0 %v2577_v53  ;;  %2128 = vmatprep.subr.bf16.mxu1 %v2580_v57 }
 0x482   :  { %2098 = vmatpush1.bf16.msra.mxu0 %v2583_v63  ;;  %2130 = vmatpush1.bf16.msra.mxu1 %v2587_v1 }
 0x483   :  { %2100 = vmatprep.subr.bf16.mxu0 %v2589_v2  ;;  %2132 = vmatprep.subr.bf16.mxu1 %v2592_v7 }
 0x486   :  { %2102 = vmatpush1.bf16.msra.mxu0 %v2595_v16  ;;  %2134 = vmatpush1.bf16.msra.mxu1 %v2599_v19 }
 0x487   :  { %2104 = vmatprep.subr.bf16.mxu0 %v2601_v20  ;;  %2136 = vmatprep.subr.bf16.mxu1 %v2604_v25 }
 0x48a   :  { %2106 = vmatpush1.bf16.msra.mxu0 %v2607_v34  ;;  %2138 = vmatpush1.bf16.msra.mxu1 %v2611_v36 }
 0x48b   :  { %2108 = vmatprep.subr.bf16.mxu0 %v2613_v37  ;;  %2140 = vmatprep.subr.bf16.mxu1 %v2616_v42 }
 0x48e   :  { %2110 = vmatpush1.bf16.msra.mxu0 %v2619_v46  ;;  %2142 = vmatpush1.bf16.msra.mxu1 %v2623_v47 }
 0x48f   :  { %2144 = vmatprep.subr.bf16.mxu0 %v2532_v4  ;;  %2176 = vmatprep.subr.bf16.mxu1 %v2534_v8 }
 0x544   :  { %v977_v5 = vpop.f32.mrb[8].mxu0  ;;  %v1048_v14 = vpop.f32.mrb[8].mxu1 }
 0x545   :  { %v979_v15 = vpop.f32.mrb[9].mxu0  ;;  %v1050_v21 = vpop.f32.mrb[9].mxu1 }
 0x546   :  { %v1057_v23 = vcombine.low %v977_v5, %v979_v15  ;;  %v1058_v24 = vcombine.low %v1048_v14, %v1050_v21 }
 0x548   :  { %v1065_v28 = vrot.slane %v1057_v23, %v2664_v59  ;;  %v1072_v29 = vrot.slane %v1058_v24, %v2664_v59 }
 0x54a   :  { %v1073_v32 = vcombine.low %v1065_v28, %v1072_v29 }
 0x54c   :  { %v1075_v33 = vadd.f32 %v1073_v32, %v910_v30 }
 0x54e   :  { %v1746_v38 = vmul.f32 -1.442695, %v1075_v33  ;;  %v1083_v41 = vrot.slane %v1075_v33, 2  ;;  %v1094_v45 = vrot.slane %v1075_v33, 6  ;;  %v1091_v50 = vrot.slane %v1075_v33, 4  ;;  %v1110_v33 = vld [vmem:[#allocation6 + $0x28] sm:$0xff] }
 0x550   :  { %2344 = vpow2.f32 %v1746_v38  ;;  %v1747_v43 = vmul.f32 -1.442695, %v1083_v41  ;;  %v1748_v48 = vmul.f32 -1.442695, %v1094_v45 }
 0x552   :  { %2346 = vpow2.f32 %v1747_v43 }
 0x553   :  { %2348 = vpow2.f32 %v1748_v48 }
 0x55a   :  { %v2345_v49 = vpop.eup %2344 }
 0x55b   :  { %v1079_v54 = vadd.f32 1.0, %v2345_v49 }
 0x55c   :  { %v2347_v55 = vpop.eup %2346 }
 0x55d   :  { %2350 = vrcp.f32 %v1079_v54  ;;  %v1088_v58 = vadd.f32 1.0, %v2347_v55  ;;  %v2349_v60 = vpop.eup %2348 }
 0x55e   :  { %2352 = vtanh.f32 %v1091_v50  ;;  %v1099_v6 = vadd.f32 1.0, %v2349_v60 }
 0x55f   :  { %2354 = vrcp.f32 %v1088_v58 }
 0x560   :  { %2356 = vrcp.f32 %v1099_v6 }
 0x567   :  { %v2351_v62 = vpop.eup %2350 }
 0x568   :  { %v2353_v3 = vpop.eup %2352 }
 0x569   :  { %v2355_v56 = vpop.eup %2354  ;;  %v1103_v11 = vmul.f32 %v2353_v3, %v2351_v62 }
 0x56a   :  { %v1102_v61 = vmul.f32 %v2355_v56, %v2788_v10  ;;  %v2357_v5 = vpop.eup %2356 }
 0x56c   :  { %v2828_v12 = vadd.f32 %v1103_v11, %v1102_v61 }
 0x56e   :  { %2358 = vtanh.f32 %v2828_v12 }
 0x578   :  { %v2359_v14 = vpop.eup %2358 }
 0x579   :  { %v1106_v15 = vmul.f32 %v2359_v14, %v2357_v5 }
 0x57b   :  { %1108 = vst [vmem:[#allocation9 + $0x8] sm:$0x3] %v1106_v15  ;;  %1176 = vmatmul.mubr.f32.vlgmr.msra.gmra.mrb[10].mxu0 %v1106_v15  ;;  %1247 = vmatmul.mubr.f32.vlgmr.msra.gmra.mrb[10].mxu1 %v1106_v15 }
 0x57c   :  { %2146 = vmatpush1.bf16.msra.mxu0 %v2536_v9  ;;  %2178 = vmatpush1.bf16.msra.mxu1 %v2539_v13 }
 0x57d   :  { %2148 = vmatprep.subr.bf16.mxu0 %v2543_v17  ;;  %2180 = vmatprep.subr.bf16.mxu1 %v2545_v18 }
 0x57e   :  { %1375 = vmatprep.mubr.f32.mxu0 %v2484_v0  ;;  %1446 = vmatprep.mubr.f32.mxu1 %v2484_v0 }
 0x580   :  { %2150 = vmatpush1.bf16.msra.mxu0 %v2548_v22  ;;  %2182 = vmatpush1.bf16.msra.mxu1 %v2552_v26 }
 0x581   :  { %2152 = vmatprep.subr.bf16.mxu0 %v2554_v27  ;;  %2184 = vmatprep.subr.bf16.mxu1 %v2556_v31 }
 0x584   :  { %2154 = vmatpush1.bf16.msra.mxu0 %v2559_v35  ;;  %2186 = vmatpush1.bf16.msra.mxu1 %v2563_v39 }
 0x585   :  { %2156 = vmatprep.subr.bf16.mxu0 %v2565_v40  ;;  %2188 = vmatprep.subr.bf16.mxu1 %v2568_v44 }
 0x588   :  { %2158 = vmatpush1.bf16.msra.mxu0 %v2571_v51  ;;  %2190 = vmatpush1.bf16.msra.mxu1 %v2575_v52 }
 0x589   :  { %2160 = vmatprep.subr.bf16.mxu0 %v2577_v53  ;;  %2192 = vmatprep.subr.bf16.mxu1 %v2580_v57 }
 0x58c   :  { %2162 = vmatpush1.bf16.msra.mxu0 %v2583_v63  ;;  %2194 = vmatpush1.bf16.msra.mxu1 %v2587_v1 }
 0x58d   :  { %2164 = vmatprep.subr.bf16.mxu0 %v2589_v2  ;;  %2196 = vmatprep.subr.bf16.mxu1 %v2592_v7 }
 0x590   :  { %2166 = vmatpush1.bf16.msra.mxu0 %v2595_v16  ;;  %2198 = vmatpush1.bf16.msra.mxu1 %v2599_v19 }
 0x591   :  { %2168 = vmatprep.subr.bf16.mxu0 %v2601_v20  ;;  %2200 = vmatprep.subr.bf16.mxu1 %v2604_v25 }
 0x594   :  { %2170 = vmatpush1.bf16.msra.mxu0 %v2607_v34  ;;  %2202 = vmatpush1.bf16.msra.mxu1 %v2611_v36 }
 0x595   :  { %2172 = vmatprep.subr.bf16.mxu0 %v2613_v37  ;;  %2204 = vmatprep.subr.bf16.mxu1 %v2616_v42 }
 0x598   :  { %2174 = vmatpush1.bf16.msra.mxu0 %v2619_v46  ;;  %2206 = vmatpush1.bf16.msra.mxu1 %v2623_v47 }
 0x599   :  { %2208 = vmatprep.subr.bf16.mxu0 %v2532_v4  ;;  %2240 = vmatprep.subr.bf16.mxu1 %v2534_v8 }
 0x64e   :  { %v1177_v10 = vpop.f32.mrb[10].mxu0  ;;  %v1248_v21 = vpop.f32.mrb[10].mxu1 }
 0x64f   :  { %v1179_v23 = vpop.f32.mrb[11].mxu0  ;;  %v1250_v24 = vpop.f32.mrb[11].mxu1 }
 0x650   :  { %v1257_v28 = vcombine.low %v1177_v10, %v1179_v23  ;;  %v1258_v29 = vcombine.low %v1248_v21, %v1250_v24 }
 0x652   :  { %v1265_v30 = vrot.slane %v1257_v28, %v2664_v59  ;;  %v1272_v32 = vrot.slane %v1258_v29, %v2664_v59 }
 0x654   :  { %v1273_v38 = vcombine.low %v1265_v30, %v1272_v32 }
 0x656   :  { %v1275_v41 = vadd.f32 %v1273_v38, %v1110_v33  ;;  %v1510_v38 = vld [vmem:[#allocation6 + $0x38] sm:$0xff] }
 0x658   :  { %v1749_v43 = vmul.f32 -1.442695, %v1275_v41  ;;  %v1283_v45 = vrot.slane %v1275_v41, 2  ;;  %v1294_v4 = vrot.slane %v1275_v41, 6  ;;  %v1291_v50 = vrot.slane %v1275_v41, 4 }
 0x65a   :  { %2360 = vpow2.f32 %v1749_v43  ;;  %v1750_v48 = vmul.f32 -1.442695, %v1283_v45  ;;  %v1751_v8 = vmul.f32 -1.442695, %v1294_v4 }
 0x65c   :  { %2362 = vpow2.f32 %v1750_v48 }
 0x65d   :  { %2364 = vpow2.f32 %v1751_v8 }
 0x664   :  { %v2361_v49 = vpop.eup %2360 }
 0x665   :  { %v1279_v54 = vadd.f32 1.0, %v2361_v49 }
 0x666   :  { %v2363_v55 = vpop.eup %2362 }
 0x667   :  { %2366 = vrcp.f32 %v1279_v54  ;;  %v1288_v58 = vadd.f32 1.0, %v2363_v55  ;;  %v2365_v60 = vpop.eup %2364 }
 0x668   :  { %2368 = vtanh.f32 %v1291_v50  ;;  %v1299_v6 = vadd.f32 1.0, %v2365_v60 }
 0x669   :  { %2370 = vrcp.f32 %v1288_v58 }
 0x66a   :  { %2372 = vrcp.f32 %v1299_v6 }
 0x671   :  { %v2367_v62 = vpop.eup %2366 }
 0x672   :  { %v2369_v3 = vpop.eup %2368 }
 0x673   :  { %v2371_v56 = vpop.eup %2370  ;;  %v1303_v11 = vmul.f32 %v2369_v3, %v2367_v62 }
 0x674   :  { %v1302_v61 = vmul.f32 %v2371_v56, %v2828_v12  ;;  %v2373_v14 = vpop.eup %2372 }
 0x676   :  { %v2868_v5 = vadd.f32 %v1303_v11, %v1302_v61 }
 0x678   :  { %2374 = vtanh.f32 %v2868_v5 }
 0x682   :  { %v2375_v15 = vpop.eup %2374 }
 0x683   :  { %v1306_v10 = vmul.f32 %v2375_v15, %v2373_v14 }
 0x685   :  { %1308 = vst [vmem:[#allocation9 + $0xa] sm:$0x3] %v1306_v10  ;;  %1376 = vmatmul.mubr.f32.vlgmr.msra.gmra.mrb[12].mxu0 %v1306_v10  ;;  %1447 = vmatmul.mubr.f32.vlgmr.msra.gmra.mrb[12].mxu1 %v1306_v10 }
 0x686   :  { %2210 = vmatpush1.bf16.msra.mxu0 %v2536_v9  ;;  %2242 = vmatpush1.bf16.msra.mxu1 %v2539_v13 }
 0x687   :  { %2212 = vmatprep.subr.bf16.mxu0 %v2543_v17  ;;  %2244 = vmatprep.subr.bf16.mxu1 %v2545_v18 }
 0x688   :  { %1575 = vmatprep.mubr.f32.mxu0 %v2484_v0  ;;  %1646 = vmatprep.mubr.f32.mxu1 %v2484_v0 }
 0x68a   :  { %2214 = vmatpush1.bf16.msra.mxu0 %v2548_v22  ;;  %2246 = vmatpush1.bf16.msra.mxu1 %v2552_v26 }
 0x68b   :  { %2216 = vmatprep.subr.bf16.mxu0 %v2554_v27  ;;  %2248 = vmatprep.subr.bf16.mxu1 %v2556_v31  ;;  %v1310_v31 = vld [vmem:[#allocation6 + $0x30] sm:$0xff] }
 0x68e   :  { %2218 = vmatpush1.bf16.msra.mxu0 %v2559_v35  ;;  %2250 = vmatpush1.bf16.msra.mxu1 %v2563_v39 }
 0x68f   :  { %2220 = vmatprep.subr.bf16.mxu0 %v2565_v40  ;;  %2252 = vmatprep.subr.bf16.mxu1 %v2568_v44 }
 0x692   :  { %2222 = vmatpush1.bf16.msra.mxu0 %v2571_v51  ;;  %2254 = vmatpush1.bf16.msra.mxu1 %v2575_v52 }
 0x693   :  { %2224 = vmatprep.subr.bf16.mxu0 %v2577_v53  ;;  %2256 = vmatprep.subr.bf16.mxu1 %v2580_v57 }
 0x696   :  { %2226 = vmatpush1.bf16.msra.mxu0 %v2583_v63  ;;  %2258 = vmatpush1.bf16.msra.mxu1 %v2587_v1 }
 0x697   :  { %2228 = vmatprep.subr.bf16.mxu0 %v2589_v2  ;;  %2260 = vmatprep.subr.bf16.mxu1 %v2592_v7 }
 0x69a   :  { %2230 = vmatpush1.bf16.msra.mxu0 %v2595_v16  ;;  %2262 = vmatpush1.bf16.msra.mxu1 %v2599_v19 }
 0x69b   :  { %2232 = vmatprep.subr.bf16.mxu0 %v2601_v20  ;;  %2264 = vmatprep.subr.bf16.mxu1 %v2604_v25 }
 0x69e   :  { %2234 = vmatpush1.bf16.msra.mxu0 %v2607_v34  ;;  %2266 = vmatpush1.bf16.msra.mxu1 %v2611_v36 }
 0x69f   :  { %2236 = vmatprep.subr.bf16.mxu0 %v2613_v37  ;;  %2268 = vmatprep.subr.bf16.mxu1 %v2616_v42 }
 0x6a2   :  { %2238 = vmatpush1.bf16.msra.mxu0 %v2619_v46  ;;  %2270 = vmatpush1.bf16.msra.mxu1 %v2623_v47 }
 0x758   :  { %v1377_v0 = vpop.f32.mrb[12].mxu0  ;;  %v1448_v9 = vpop.f32.mrb[12].mxu1 }
 0x759   :  { %v1379_v13 = vpop.f32.mrb[13].mxu0  ;;  %v1450_v17 = vpop.f32.mrb[13].mxu1 }
 0x75a   :  { %v1457_v18 = vcombine.low %v1377_v0, %v1379_v13  ;;  %v1458_v22 = vcombine.low %v1448_v9, %v1450_v17 }
 0x75c   :  { %v1465_v26 = vrot.slane %v1457_v18, %v2664_v59  ;;  %v1472_v27 = vrot.slane %v1458_v22, %v2664_v59 }
 0x75e   :  { %v1473_v35 = vcombine.low %v1465_v26, %v1472_v27 }
 0x760   :  { %v1475_v39 = vadd.f32 %v1473_v35, %v1310_v31 }
 0x762   :  { %v1752_v40 = vmul.f32 -1.442695, %v1475_v39  ;;  %v1483_v44 = vrot.slane %v1475_v39, 2  ;;  %v1494_v52 = vrot.slane %v1475_v39, 6  ;;  %v1491_v63 = vrot.slane %v1475_v39, 4 }
 0x764   :  { %2376 = vpow2.f32 %v1752_v40  ;;  %v1753_v51 = vmul.f32 -1.442695, %v1483_v44  ;;  %v1754_v53 = vmul.f32 -1.442695, %v1494_v52 }
 0x766   :  { %2378 = vpow2.f32 %v1753_v51 }
 0x767   :  { %2380 = vpow2.f32 %v1754_v53 }
 0x76e   :  { %v2377_v57 = vpop.eup %2376 }
 0x76f   :  { %v1479_v1 = vadd.f32 1.0, %v2377_v57 }
 0x770   :  { %v2379_v2 = vpop.eup %2378 }
 0x771   :  { %2382 = vrcp.f32 %v1479_v1  ;;  %v1488_v7 = vadd.f32 1.0, %v2379_v2  ;;  %v2381_v16 = vpop.eup %2380 }
 0x772   :  { %2384 = vtanh.f32 %v1491_v63  ;;  %v1499_v34 = vadd.f32 1.0, %v2381_v16 }
 0x773   :  { %2386 = vrcp.f32 %v1488_v7 }
 0x774   :  { %2388 = vrcp.f32 %v1499_v34 }
 0x77b   :  { %v2383_v19 = vpop.eup %2382 }
 0x77c   :  { %v2385_v20 = vpop.eup %2384 }
 0x77d   :  { %v2387_v25 = vpop.eup %2386  ;;  %v1503_v37 = vmul.f32 %v2385_v20, %v2383_v19 }
 0x77e   :  { %v1502_v36 = vmul.f32 %v2387_v25, %v2868_v5  ;;  %v2389_v46 = vpop.eup %2388 }
 0x780   :  { %v1504_v42 = vadd.f32 %v1503_v37, %v1502_v36 }
 0x782   :  { %2390 = vtanh.f32 %v1504_v42 }
 0x78c   :  { %v2391_v47 = vpop.eup %2390 }
 0x78d   :  { %v1506_v12 = vmul.f32 %v2391_v47, %v2389_v46 }
 0x78f   :  { %1508 = vst [vmem:[#allocation9 + $0xc] sm:$0x3] %v1506_v12  ;;  %1576 = vmatmul.mubr.f32.vlgmr.msra.gmra.mrb[14].mxu0 %v1506_v12  ;;  %1647 = vmatmul.mubr.f32.vlgmr.msra.gmra.mrb[14].mxu1 %v1506_v12 }
 0x862   :  { %v1577_v21 = vpop.f32.mrb[14].mxu0  ;;  %v1648_v23 = vpop.f32.mrb[14].mxu1 }
 0x863   :  { %v1579_v24 = vpop.f32.mrb[15].mxu0  ;;  %v1650_v28 = vpop.f32.mrb[15].mxu1 }
 0x864   :  { %v1657_v29 = vcombine.low %v1577_v21, %v1579_v24  ;;  %v1658_v30 = vcombine.low %v1648_v23, %v1650_v28 }
 0x866   :  { %v1665_v32 = vrot.slane %v1657_v29, %v2664_v59  ;;  %v1672_v33 = vrot.slane %v1658_v30, %v2664_v59 }
 0x868   :  { %v1673_v41 = vcombine.low %v1665_v32, %v1672_v33 }
 0x86a   :  { %v1675_v43 = vadd.f32 %v1673_v41, %v1510_v38 }
 0x86c   :  { %v1755_v45 = vmul.f32 -1.442695, %v1675_v43  ;;  %v1683_v48 = vrot.slane %v1675_v43, 2  ;;  %v1694_v8 = vrot.slane %v1675_v43, 6  ;;  %v1691_v54 = vrot.slane %v1675_v43, 4 }
 0x86e   :  { %2392 = vpow2.f32 %v1755_v45  ;;  %v1756_v4 = vmul.f32 -1.442695, %v1683_v48  ;;  %v1757_v49 = vmul.f32 -1.442695, %v1694_v8 }
 0x870   :  { %2394 = vpow2.f32 %v1756_v4 }
 0x871   :  { %2396 = vpow2.f32 %v1757_v49 }
 0x878   :  { %v2393_v50 = vpop.eup %2392 }
 0x879   :  { %v1679_v55 = vadd.f32 1.0, %v2393_v50 }
 0x87a   :  { %v2395_v58 = vpop.eup %2394 }
 0x87b   :  { %2398 = vrcp.f32 %v1679_v55  ;;  %v1688_v60 = vadd.f32 1.0, %v2395_v58  ;;  %v2397_v59 = vpop.eup %2396 }
 0x87c   :  { %2400 = vtanh.f32 %v1691_v54  ;;  %v1699_v6 = vadd.f32 1.0, %v2397_v59 }
 0x87d   :  { %2402 = vrcp.f32 %v1688_v60 }
 0x87e   :  { %2404 = vrcp.f32 %v1699_v6 }
 0x885   :  { %v2399_v62 = vpop.eup %2398 }
 0x886   :  { %v2401_v3 = vpop.eup %2400 }
 0x887   :  { %v2403_v56 = vpop.eup %2402  ;;  %v1703_v11 = vmul.f32 %v2401_v3, %v2399_v62 }
 0x888   :  { %v1702_v61 = vmul.f32 %v2403_v56, %v1504_v42  ;;  %v2405_v14 = vpop.eup %2404 }
 0x88a   :  { %v1704_v5 = vadd.f32 %v1703_v11, %v1702_v61 }
 0x88c   :  { %2406 = vtanh.f32 %v1704_v5  ;;  %1710 = vst [vmem:[#allocation4] sm:$0x3] %v1704_v5 }
 0x896   :  { %v2407_v15 = vpop.eup %2406 }
 0x897   :  { %v1706_v10 = vmul.f32 %v2407_v15, %v2405_v14 }
 0x899   :  { %1708 = vst [vmem:[#allocation9 + $0xe] sm:$0x3] %v1706_v10  ;;  %1709 = vst [vmem:[#allocation3] sm:$0x3] %v1706_v10 }
 0x89a   :  { %2463 = shalt.err (!%p2460_p6)
}
 0x89b   :  { %s2464_s10 = scalar_lea.hbm %s2922_s2, 256 }
 0x89c   :  { %p2465_p7 = scmp.ne.s32.totalorder %s2922_s2, %s2464_s10  ;;  %p2468_p8 = scmp.lt.u32.totalorder %s2464_s10, %s2922_s2 }
 0x89e   :  { %p2470_p9 = pnand %p2468_p8, %p2465_p7 }
 0x8a0   :  { %2473 = shalt.err (!%p2470_p9)
}
 0x8a1   :  { %s2487_s15 = smov 32   ;;  %s2488_s16 = smov 2  }
 0x8a2   :  { %1722 = dma.vmem_to_hbm [thread:$0]  %s1717_s6, 256, %s2922_s2, [#allocation8], %s2487_s15, %s2487_s15, %s2488_s16  }
 0x8a3   :  { %2478 = dma.done.wait [#allocation8], 256  }
 0x8a4   :  { %2479 = vsyncadd [#allocation8], 4294967040 }
 0x8a5   :  { %1726 = vsyncpa [#allocation7], 1 }
 0x8a6   :  { %1727 = vsyncpa [#allocation8], 1 }
 0x8a7   :  { %1728 = vsyncmov [#allocation5] }
 0x8aa   :  { %s1729_s19 = vpop.sfrf %1728 }
 0x8ab   :  { %p1758_p10 = scmp.ne.s32.totalorder %s1729_s19, 0 }
 0x8ad   :  { %1733 = shalt.err (%p1758_p10)  }

</bundles_post_ra>
